<compile_context>
chip_gen: v7x
topology: tpu7x:2x2x1
jax: 0.10.0
libtpu: 0.0.40
codegen_flags: <defaults>
</compile_context>

<pallas_src>
import functools

import numpy as np
import jax
import jax.numpy as jnp
from jax import lax
from jax.experimental import pallas as pl
from jax.experimental.pallas import tpu as pltpu


MATMUL_DTYPE = jnp.bfloat16     # MXU operand dtype (accumulation stays f32)
LN_EPS = 1e-5                   # torch.nn.LayerNorm default
_ROW_TILE_CAP = 256             # rows (B*T) per block for the linear kernels
_VOCAB_TILE_CAP = 512           # vocab columns per block for the logits head


def _pick_tile(dim, cap, unit):
    """Largest tile <= cap that is a multiple of `unit` and divides `dim`.

    Falls back to the full dimension (always a legal block) when nothing fits.
    """
    if dim <= cap:
        return dim
    t = (cap // unit) * unit
    while t >= unit:
        if dim % t == 0:
            return t
        t -= unit
    return dim


# ----------------------------- Pallas kernels ------------------------------

def _ln_linear_kernel(x_ref, g_ref, bln_ref, w_ref, b_ref, o_ref):
    """y = LayerNorm(x) @ W + b   (LN fused into the projection prologue)."""
    x = x_ref[...].astype(jnp.float32)
    mean = jnp.mean(x, axis=-1, keepdims=True)
    var = jnp.mean(jnp.square(x - mean), axis=-1, keepdims=True)
    xn = (x - mean) * lax.rsqrt(var + LN_EPS)
    xn = xn * g_ref[...] + bln_ref[...]
    y = jnp.dot(xn.astype(MATMUL_DTYPE), w_ref[...],
                preferred_element_type=jnp.float32) + b_ref[...]
    o_ref[...] = y.astype(o_ref.dtype)


def _linear_residual_kernel(x_ref, w_ref, b_ref, r_ref, o_ref):
    """y = residual + x @ W + b   (residual fused into the epilogue)."""
    y = jnp.dot(x_ref[...].astype(MATMUL_DTYPE), w_ref[...],
                preferred_element_type=jnp.float32)
    o_ref[...] = (y + b_ref[...] + r_ref[...].astype(jnp.float32)
                  ).astype(o_ref.dtype)


def _ln_mlp_residual_kernel(x_ref, g_ref, bln_ref, w1_ref, b1_ref,
                            w2_ref, b2_ref, o_ref):
    """y = x + W2 @ GELU(W1 @ LN(x) + b1) + b2   (whole MLP sub-block fused)."""
    x = x_ref[...].astype(jnp.float32)
    mean = jnp.mean(x, axis=-1, keepdims=True)
    var = jnp.mean(jnp.square(x - mean), axis=-1, keepdims=True)
    xn = (x - mean) * lax.rsqrt(var + LN_EPS) * g_ref[...] + bln_ref[...]
    h = jnp.dot(xn.astype(MATMUL_DTYPE), w1_ref[...],
                preferred_element_type=jnp.float32) + b1_ref[...]
    # Exact erf GELU, matching torch.nn.GELU(approximate='none').
    h = 0.5 * h * (1.0 + lax.erf(h * 0.7071067811865476))
    y = jnp.dot(h.astype(MATMUL_DTYPE), w2_ref[...],
                preferred_element_type=jnp.float32) + b2_ref[...]
    o_ref[...] = (x + y).astype(o_ref.dtype)


def _attention_kernel(qkv_ref, o_ref, *, heads):
    """SDPA for one batch element, all heads in one grid step.

    qkv_ref: (T, 3E) packed as [q | k | v] with heads contiguous inside each
    (same layout as rearrange 'b t (n h e)').  Output: (T, E) lane-dense.
    """
    # TODO(synk): for long sequences this should become a flash-style
    # online-softmax tiled over KV (kv grid axis 'arbitrary', m/l/acc in VMEM
    # scratch) so the (T, S) score block stays bounded.
    T, E3 = qkv_ref.shape
    E = E3 // 3
    dh = E // heads
    qkv = qkv_ref[...].astype(jnp.float32)
    scale = 1.0 / float(np.sqrt(dh))
    ctx = []
    for h in range(heads):                      # static unroll over heads
        q = qkv[:, h * dh:(h + 1) * dh]
        k = qkv[:, E + h * dh:E + (h + 1) * dh]
        v = qkv[:, 2 * E + h * dh:2 * E + (h + 1) * dh]
        s = lax.dot_general(q.astype(MATMUL_DTYPE), k.astype(MATMUL_DTYPE),
                            (((1,), (1,)), ((), ())),
                            preferred_element_type=jnp.float32) * scale
        s = s - jnp.max(s, axis=-1, keepdims=True)
        p = jnp.exp(s)
        # EUP reciprocal instead of a VPU divide.
        p = p * pl.reciprocal(jnp.sum(p, axis=-1, keepdims=True), approx=True)
        ctx.append(jnp.dot(p.astype(MATMUL_DTYPE), v.astype(MATMUL_DTYPE),
                           preferred_element_type=jnp.float32))
    o_ref[...] = jnp.concatenate(ctx, axis=-1).astype(o_ref.dtype)


def _lse_kernel(x_ref, e_ref, lse_ref, m_scr, l_scr):
    """Pass 1 of the log-softmax head: streaming logsumexp over vocab tiles."""
    @pl.when(pl.program_id(1) == 0)
    def _():
        m_scr[...] = jnp.full_like(m_scr, -jnp.inf)
        l_scr[...] = jnp.zeros_like(l_scr)

    # Contract against the (V, E) embedding layout directly (no transpose).
    s = lax.dot_general(x_ref[...].astype(MATMUL_DTYPE), e_ref[...],
                        (((1,), (1,)), ((), ())),
                        preferred_element_type=jnp.float32)
    m_prev = m_scr[...]
    m_new = jnp.maximum(m_prev, jnp.max(s, axis=-1, keepdims=True))
    l_scr[...] = (jnp.exp(m_prev - m_new) * l_scr[...]
                  + jnp.sum(jnp.exp(s - m_new), axis=-1, keepdims=True))
    m_scr[...] = m_new

    @pl.when(pl.program_id(1) == pl.num_programs(1) - 1)
    def _():
        lse_ref[...] = (m_scr[...] + jnp.log(l_scr[...])).astype(lse_ref.dtype)


def _logsoftmax_kernel(x_ref, e_ref, lse_ref, o_ref):
    """Pass 2 of the log-softmax head: logits tile minus the per-row LSE."""
    s = lax.dot_general(x_ref[...].astype(MATMUL_DTYPE), e_ref[...],
                        (((1,), (1,)), ((), ())),
                        preferred_element_type=jnp.float32)
    o_ref[...] = (s - lse_ref[...]).astype(o_ref.dtype)


# ------------------------------ Pallas wrappers -----------------------------

def pallas_ln_linear(x, gamma, beta, w, bias=None):
    B, T, E = x.shape
    dout = w.shape[1]
    m = B * T
    tm = _pick_tile(m, _ROW_TILE_CAP, 8)
    if bias is None:
        bias = jnp.zeros((dout,), jnp.float32)
    out = pl.pallas_call(
        _ln_linear_kernel,
        grid=(m // tm,),
        in_specs=[pl.BlockSpec((tm, E), lambda i: (i, 0)),
                  pl.BlockSpec((1, E), lambda i: (0, 0)),
                  pl.BlockSpec((1, E), lambda i: (0, 0)),
                  pl.BlockSpec((E, dout), lambda i: (0, 0)),   # weight resident
                  pl.BlockSpec((1, dout), lambda i: (0, 0))],
        out_specs=pl.BlockSpec((tm, dout), lambda i: (i, 0)),
        out_shape=jax.ShapeDtypeStruct((m, dout), jnp.float32),
        compiler_params=pltpu.CompilerParams(dimension_semantics=("parallel",)),
    )(x.reshape(m, E), gamma.reshape(1, E), beta.reshape(1, E),
      w.astype(MATMUL_DTYPE), bias.reshape(1, dout).astype(jnp.float32))
    return out.reshape(B, T, dout)


def pallas_linear_residual(x, w, bias, residual):
    B, T, E = x.shape
    dout = w.shape[1]
    m = B * T
    tm = _pick_tile(m, _ROW_TILE_CAP, 8)
    if bias is None:
        bias = jnp.zeros((dout,), jnp.float32)
    out = pl.pallas_call(
        _linear_residual_kernel,
        grid=(m // tm,),
        in_specs=[pl.BlockSpec((tm, E), lambda i: (i, 0)),
                  pl.BlockSpec((E, dout), lambda i: (0, 0)),   # weight resident
                  pl.BlockSpec((1, dout), lambda i: (0, 0)),
                  pl.BlockSpec((tm, dout), lambda i: (i, 0))],
        out_specs=pl.BlockSpec((tm, dout), lambda i: (i, 0)),
        out_shape=jax.ShapeDtypeStruct((m, dout), jnp.float32),
        compiler_params=pltpu.CompilerParams(dimension_semantics=("parallel",)),
    )(x.reshape(m, E), w.astype(MATMUL_DTYPE),
      bias.reshape(1, dout).astype(jnp.float32), residual.reshape(m, dout))
    return out.reshape(B, T, dout)


def pallas_ln_mlp_residual(x, gamma, beta, w1, b1, w2, b2):
    B, T, E = x.shape
    hid = w1.shape[1]
    m = B * T
    tm = _pick_tile(m, _ROW_TILE_CAP, 8)
    out = pl.pallas_call(
        _ln_mlp_residual_kernel,
        grid=(m // tm,),
        in_specs=[pl.BlockSpec((tm, E), lambda i: (i, 0)),
                  pl.BlockSpec((1, E), lambda i: (0, 0)),
                  pl.BlockSpec((1, E), lambda i: (0, 0)),
                  pl.BlockSpec((E, hid), lambda i: (0, 0)),    # weights resident
                  pl.BlockSpec((1, hid), lambda i: (0, 0)),
                  pl.BlockSpec((hid, E), lambda i: (0, 0)),
                  pl.BlockSpec((1, E), lambda i: (0, 0))],
        out_specs=pl.BlockSpec((tm, E), lambda i: (i, 0)),
        out_shape=jax.ShapeDtypeStruct((m, E), jnp.float32),
        compiler_params=pltpu.CompilerParams(dimension_semantics=("parallel",)),
    )(x.reshape(m, E), gamma.reshape(1, E), beta.reshape(1, E),
      w1.astype(MATMUL_DTYPE), b1.reshape(1, hid).astype(jnp.float32),
      w2.astype(MATMUL_DTYPE), b2.reshape(1, E).astype(jnp.float32))
    return out.reshape(B, T, E)


def pallas_attention(qkv, heads):
    # qkv: (B, T, 3E) -> (B, T, E); one grid step per batch element, all heads.
    B, T, E3 = qkv.shape
    E = E3 // 3
    return pl.pallas_call(
        functools.partial(_attention_kernel, heads=heads),
        grid=(B,),
        in_specs=[pl.BlockSpec((None, T, E3), lambda b: (b, 0, 0))],
        out_specs=pl.BlockSpec((None, T, E), lambda b: (b, 0, 0)),
        out_shape=jax.ShapeDtypeStruct((B, T, E), jnp.float32),
        compiler_params=pltpu.CompilerParams(dimension_semantics=("parallel",)),
    )(qkv)


def pallas_log_softmax_logits(x, embedding):
    """log_softmax(x @ embedding.T) with vocab tiling + streaming LSE."""
    B, T, E = x.shape
    V = embedding.shape[0]
    m = B * T
    tm = _pick_tile(m, _ROW_TILE_CAP, 8)
    tv = _pick_tile(V, _VOCAB_TILE_CAP, 128)
    nm, nv = m // tm, V // tv
    x2 = x.reshape(m, E)
    emb = embedding.astype(MATMUL_DTYPE)   # (V, E); contracted in-kernel (no .T copy)

    lse = pl.pallas_call(
        _lse_kernel,
        grid=(nm, nv),
        in_specs=[pl.BlockSpec((tm, E), lambda i, v: (i, 0)),
                  pl.BlockSpec((tv, E), lambda i, v: (v, 0))],
        out_specs=pl.BlockSpec((tm, 1), lambda i, v: (i, 0)),
        out_shape=jax.ShapeDtypeStruct((m, 1), jnp.float32),
        scratch_shapes=[pltpu.VMEM((tm, 1), jnp.float32),   # running max
                        pltpu.VMEM((tm, 1), jnp.float32)],  # running sum
        compiler_params=pltpu.CompilerParams(
            dimension_semantics=("parallel", "arbitrary")),
    )(x2, emb)

    out = pl.pallas_call(
        _logsoftmax_kernel,
        grid=(nm, nv),
        in_specs=[pl.BlockSpec((tm, E), lambda i, v: (i, 0)),
                  pl.BlockSpec((tv, E), lambda i, v: (v, 0)),
                  pl.BlockSpec((tm, 1), lambda i, v: (i, 0))],
        out_specs=pl.BlockSpec((tm, tv), lambda i, v: (i, v)),
        out_shape=jax.ShapeDtypeStruct((m, V), jnp.float32),
        compiler_params=pltpu.CompilerParams(
            dimension_semantics=("parallel", "parallel")),
    )(x2, emb, lse)
    return out.reshape(B, T, V)


# ------------------------------- Model blocks -------------------------------

def encoder_block(x, p, heads):
    # x + SelfAttn(LN0(x))
    qkv = pallas_ln_linear(x, p["ln0_g"], p["ln0_b"], p["attn"]["w_qkv"])
    ctx = pallas_attention(qkv, heads)
    x = pallas_linear_residual(ctx, p["attn"]["w_o"], None, x)
    # x + MLP(LN1(x))
    x = pallas_ln_mlp_residual(x, p["ln1_g"], p["ln1_b"],
                               p["mlp"]["w1"], p["mlp"]["b1"],
                               p["mlp"]["w2"], p["mlp"]["b2"])
    return x


def decoder_block(x, y, p, heads):
    # Self-attention (reference Attention module has no biases).
    qkv = pallas_ln_linear(x, p["ln0_g"], p["ln0_b"], p["attn"]["w_qkv"])
    ctx = pallas_attention(qkv, heads)
    x = pallas_linear_residual(ctx, p["attn"]["w_o"], None, x)
    # Cross-attention: the reference computes q, k AND v from x — y is unused.
    del y
    qkv = pallas_ln_linear(x, p["ln1_g"], p["ln1_b"],
                           p["xattn"]["w_qkv"], p["xattn"]["b_qkv"])
    ctx = pallas_attention(qkv, heads)
    x = pallas_linear_residual(ctx, p["xattn"]["w_o"], p["xattn"]["b_o"], x)
    # MLP.
    x = pallas_ln_mlp_residual(x, p["ln2_g"], p["ln2_b"],
                               p["mlp"]["w1"], p["mlp"]["b1"],
                               p["mlp"]["w2"], p["mlp"]["b2"])
    return x


def transformer_forward(params, source, target, mask=None, *, heads):
    # TODO(synk): only mask=None is wired (the reference encoder and
    # cross-attention hard-code mask=None; the docstring example also uses None).
    del mask
    emb = params["embedding"]            # (V, E)
    x = emb[source]                      # embedding gather (plain JAX glue)
    for p in params["encoder"]:
        x = encoder_block(x, p, heads)
    y = x
    x = emb[target]
    for p in params["decoder"]:
        x = decoder_block(x, y, p, heads)
    return pallas_log_softmax_logits(x, emb)


# ---------------------------- Parameter creation ----------------------------

def init_params(key, *, vocab, embed, heads, layers):
    del heads
    E = embed
    keys = iter(jax.random.split(key, 4096))

    def dense(din, dout, scale=0.05):
        return scale * jax.random.normal(next(keys), (din, dout), jnp.float32)

    def bias(d, scale=0.01):
        return scale * jax.random.normal(next(keys), (d,), jnp.float32)

    def attn_params():
        return {"w_qkv": dense(E, 3 * E), "w_o": dense(E, E)}

    def xattn_params():
        # q/k/v projections fused into one (E, 3E) weight + (3E,) bias.
        return {"w_qkv": dense(E, 3 * E), "b_qkv": bias(3 * E),
                "w_o": dense(E, E), "b_o": bias(E)}

    def mlp_params():
        return {"w1": dense(E, 3 * E), "b1": bias(3 * E),
                "w2": dense(3 * E, E), "b2": bias(E)}

    def ln():
        return jnp.ones((E,), jnp.float32), jnp.zeros((E,), jnp.float32)

    params = {"embedding": 0.05 * jax.random.normal(next(keys), (vocab, E),
                                                    jnp.float32)}
    enc, dec = [], []
    for _ in range(layers):
        g0, b0 = ln(); g1, b1 = ln()
        enc.append({"attn": attn_params(), "mlp": mlp_params(),
                    "ln0_g": g0, "ln0_b": b0, "ln1_g": g1, "ln1_b": b1})
    for _ in range(layers):
        g0, b0 = ln(); g1, b1 = ln(); g2, b2 = ln()
        dec.append({"attn": attn_params(), "xattn": xattn_params(),
                    "mlp": mlp_params(),
                    "ln0_g": g0, "ln0_b": b0,
                    "ln1_g": g1, "ln1_b": b1,
                    "ln2_g": g2, "ln2_b": b2})
    params["encoder"] = enc
    params["decoder"] = dec
    return params


# ------------------------------------ main -----------------------------------

if __name__ == "__main__":
    EMBED, HEADS, LAYERS, VOCAB = 32, 4, 2, 64
    BATCH, SRC_LEN, TGT_LEN = 2, 8, 8

    key = jax.random.PRNGKey(0)
    pkey, skey, tkey = jax.random.split(key, 3)
    params = init_params(pkey, vocab=VOCAB, embed=EMBED,
                         heads=HEADS, layers=LAYERS)
    source = jax.random.randint(skey, (BATCH, SRC_LEN), 0, VOCAB, jnp.int32)
    target = jax.random.randint(tkey, (BATCH, TGT_LEN), 0, VOCAB, jnp.int32)

    fwd = jax.jit(functools.partial(transformer_forward, heads=HEADS))
    logits = jax.block_until_ready(fwd(params, source, target))

    assert logits.shape == (BATCH, TGT_LEN, VOCAB), logits.shape
    assert bool(jnp.all(jnp.isfinite(logits)))
    # log_softmax rows should sum to ~1 in prob space.
    assert bool(jnp.allclose(jnp.sum(jnp.exp(logits), axis=-1), 1.0, atol=1e-4))
    print("KERNEL_OK")
</pallas_src>

<mosaic_0001>
module attributes {stable_mosaic.version = 11 : i64} {
  func.func @_linear_residual_kernel(%arg0: i32, %arg1: memref<16x32xf32, #tpu.memory_space<vmem>>, %arg2: memref<32x32xbf16, #tpu.memory_space<vmem>>, %arg3: memref<1x32xf32, #tpu.memory_space<vmem>>, %arg4: memref<16x32xf32, #tpu.memory_space<vmem>>, %arg5: memref<16x32xf32, #tpu.memory_space<vmem>>) attributes {dimension_semantics = [#tpu.dimension_semantics<parallel>], iteration_bounds = array<i64: 1>, scalar_prefetch = 0 : i64, scratch_operands = 0 : i64, tpu.core_type = #tpu.core_type<tc>, window_params = [{transform_indices = @transform_0, window_bounds = array<i64: 16, 32>}, {pipeline_mode = #tpu.pipeline_mode<synchronous>, transform_indices = @transform_1, window_bounds = array<i64: 32, 32>}, {pipeline_mode = #tpu.pipeline_mode<synchronous>, transform_indices = @transform_2, window_bounds = array<i64: 1, 32>}, {transform_indices = @transform_3, window_bounds = array<i64: 16, 32>}, {transform_indices = @transform_4, window_bounds = array<i64: 16, 32>}]} {
    %c0 = arith.constant 0 : index
    %c0_0 = arith.constant 0 : index
    %0 = vector.load %arg1[%c0, %c0_0] : memref<16x32xf32, #tpu.memory_space<vmem>>, vector<16x32xf32>
    %1 = arith.truncf %0 : vector<16x32xf32> to vector<16x32xbf16>
    %c0_1 = arith.constant 0 : index
    %c0_2 = arith.constant 0 : index
    %2 = vector.load %arg2[%c0_1, %c0_2] : memref<32x32xbf16, #tpu.memory_space<vmem>>, vector<32x32xbf16>
    %cst = arith.constant dense<0.000000e+00> : vector<16x32xf32>
    %3 = tpu.matmul %1, %2, %cst {dimension_numbers = #tpu.dot_dimension_numbers<[1], [0], [0], [1], [0, 0, 1, 1], [], []>} : vector<16x32xbf16>, vector<32x32xbf16>, vector<16x32xf32> -> vector<16x32xf32>
    %c0_3 = arith.constant 0 : index
    %c0_4 = arith.constant 0 : index
    %4 = vector.load %arg3[%c0_3, %c0_4] : memref<1x32xf32, #tpu.memory_space<vmem>>, vector<1x32xf32>
    %5 = vector.broadcast %4 : vector<1x32xf32> to vector<16x32xf32>
    %6 = arith.addf %3, %5 : vector<16x32xf32>
    %c0_5 = arith.constant 0 : index
    %c0_6 = arith.constant 0 : index
    %7 = vector.load %arg4[%c0_5, %c0_6] : memref<16x32xf32, #tpu.memory_space<vmem>>, vector<16x32xf32>
    %8 = arith.addf %6, %7 : vector<16x32xf32>
    %c0_7 = arith.constant 0 : index
    %c0_8 = arith.constant 0 : index
    %9 = vector.load %arg5[%c0_7, %c0_8] : memref<16x32xf32, #tpu.memory_space<vmem>>, vector<16x32xf32>
    tpu.vector_store %arg5[%c0_7, %c0_8], %8 {strides = array<i32>} : memref<16x32xf32, #tpu.memory_space<vmem>>, vector<16x32xf32>,
    return
  }
  func.func @transform_0(%arg0: i32) -> (i32, i32) {
    %c0_i32 = arith.constant 0 : i32
    %c0_i32_0 = arith.constant 0 : i32
    return %arg0, %c0_i32 : i32, i32
  }
  func.func @transform_1(%arg0: i32) -> (i32, i32) {
    %c0_i32 = arith.constant 0 : i32
    %c0_i32_0 = arith.constant 0 : i32
    %c0_i32_1 = arith.constant 0 : i32
    return %c0_i32, %c0_i32_0 : i32, i32
  }
  func.func @transform_2(%arg0: i32) -> (i32, i32) {
    %c0_i32 = arith.constant 0 : i32
    %c0_i32_0 = arith.constant 0 : i32
    %c0_i32_1 = arith.constant 0 : i32
    return %c0_i32, %c0_i32_0 : i32, i32
  }
  func.func @transform_3(%arg0: i32) -> (i32, i32) {
    %c0_i32 = arith.constant 0 : i32
    %c0_i32_0 = arith.constant 0 : i32
    return %arg0, %c0_i32 : i32, i32
  }
  func.func @transform_4(%arg0: i32) -> (i32, i32) {
    %c0_i32 = arith.constant 0 : i32
    %c0_i32_0 = arith.constant 0 : i32
    return %arg0, %c0_i32 : i32, i32
  }
}

module attributes {stable_mosaic.version = 11 : i64} {
  func.func @_attention_kernel(%arg0: i32, %arg1: memref<1x8x96xf32, #tpu.memory_space<vmem>>, %arg2: memref<1x8x32xf32, #tpu.memory_space<vmem>>) attributes {dimension_semantics = [#tpu.dimension_semantics<parallel>], iteration_bounds = array<i64: 2>, scalar_prefetch = 0 : i64, scratch_operands = 0 : i64, tpu.core_type = #tpu.core_type<tc>, window_params = [{transform_indices = @transform_0, window_bounds = array<i64: 1, 8, 96>}, {transform_indices = @transform_1, window_bounds = array<i64: 1, 8, 32>}]} {
    %c0 = arith.constant 0 : index
    %c0_0 = arith.constant 0 : index
    %c0_1 = arith.constant 0 : index
    %0 = vector.load %arg1[%c0, %c0_0, %c0_1] : memref<1x8x96xf32, #tpu.memory_space<vmem>>, vector<1x8x96xf32>
    %1 = vector.shape_cast %0 : vector<1x8x96xf32> to vector<8x96xf32>
    %2 = vector.extract_strided_slice %1 {offsets = [0, 0], sizes = [8, 8], strides = [1, 1]} : vector<8x96xf32> to vector<8x8xf32>
    %3 = vector.extract_strided_slice %1 {offsets = [0, 32], sizes = [8, 8], strides = [1, 1]} : vector<8x96xf32> to vector<8x8xf32>
    %4 = vector.extract_strided_slice %1 {offsets = [0, 64], sizes = [8, 8], strides = [1, 1]} : vector<8x96xf32> to vector<8x8xf32>
    %5 = arith.truncf %2 : vector<8x8xf32> to vector<8x8xbf16>
    %6 = arith.truncf %3 : vector<8x8xf32> to vector<8x8xbf16>
    %cst = arith.constant dense<0.000000e+00> : vector<8x8xf32>
    %7 = tpu.matmul %5, %6, %cst {dimension_numbers = #tpu.dot_dimension_numbers<[1], [1], [0], [0], [0, 0, 1, 0], [], []>} : vector<8x8xbf16>, vector<8x8xbf16>, vector<8x8xf32> -> vector<8x8xf32>
    %cst_2 = arith.constant 0.353553385 : f32
    %8 = vector.broadcast %cst_2 : f32 to vector<8x8xf32>
    %9 = arith.mulf %7, %8 : vector<8x8xf32>
    %cst_3 = arith.constant dense<0xFF800000> : vector<8xf32>
    %10 = vector.multi_reduction <maximumf>, %9, %cst_3 [1] : vector<8x8xf32> to vector<8xf32>
    %11 = vector.shape_cast %10 : vector<8xf32> to vector<8x1xf32>
    %12 = vector.broadcast %11 : vector<8x1xf32> to vector<8x8xf32>
    %13 = arith.subf %9, %12 : vector<8x8xf32>
    %14 = math.exp %13 : vector<8x8xf32>
    %cst_4 = arith.constant dense<0.000000e+00> : vector<8xf32>
    %15 = vector.multi_reduction <add>, %14, %cst_4 [1] : vector<8x8xf32> to vector<8xf32>
    %16 = vector.shape_cast %15 : vector<8xf32> to vector<8x1xf32>
    %17 = tpu.reciprocal %16 {approx = true} : vector<8x1xf32> -> vector<8x1xf32>
    %18 = vector.broadcast %17 : vector<8x1xf32> to vector<8x8xf32>
    %19 = arith.mulf %14, %18 : vector<8x8xf32>
    %20 = arith.truncf %19 : vector<8x8xf32> to vector<8x8xbf16>
    %21 = arith.truncf %4 : vector<8x8xf32> to vector<8x8xbf16>
    %cst_5 = arith.constant dense<0.000000e+00> : vector<8x8xf32>
    %22 = tpu.matmul %20, %21, %cst_5 {dimension_numbers = #tpu.dot_dimension_numbers<[1], [0], [0], [1], [0, 0, 1, 1], [], []>} : vector<8x8xbf16>, vector<8x8xbf16>, vector<8x8xf32> -> vector<8x8xf32>
    %23 = vector.extract_strided_slice %1 {offsets = [0, 8], sizes = [8, 8], strides = [1, 1]} : vector<8x96xf32> to vector<8x8xf32>
    %24 = vector.extract_strided_slice %1 {offsets = [0, 40], sizes = [8, 8], strides = [1, 1]} : vector<8x96xf32> to vector<8x8xf32>
    %25 = vector.extract_strided_slice %1 {offsets = [0, 72], sizes = [8, 8], strides = [1, 1]} : vector<8x96xf32> to vector<8x8xf32>
    %26 = arith.truncf %23 : vector<8x8xf32> to vector<8x8xbf16>
    %27 = arith.truncf %24 : vector<8x8xf32> to vector<8x8xbf16>
    %cst_6 = arith.constant dense<0.000000e+00> : vector<8x8xf32>
    %28 = tpu.matmul %26, %27, %cst_6 {dimension_numbers = #tpu.dot_dimension_numbers<[1], [1], [0], [0], [0, 0, 1, 0], [], []>} : vector<8x8xbf16>, vector<8x8xbf16>, vector<8x8xf32> -> vector<8x8xf32>
    %cst_7 = arith.constant 0.353553385 : f32
    %29 = vector.broadcast %cst_7 : f32 to vector<8x8xf32>
    %30 = arith.mulf %28, %29 : vector<8x8xf32>
    %cst_8 = arith.constant dense<0xFF800000> : vector<8xf32>
    %31 = vector.multi_reduction <maximumf>, %30, %cst_8 [1] : vector<8x8xf32> to vector<8xf32>
    %32 = vector.shape_cast %31 : vector<8xf32> to vector<8x1xf32>
    %33 = vector.broadcast %32 : vector<8x1xf32> to vector<8x8xf32>
    %34 = arith.subf %30, %33 : vector<8x8xf32>
    %35 = math.exp %34 : vector<8x8xf32>
    %cst_9 = arith.constant dense<0.000000e+00> : vector<8xf32>
    %36 = vector.multi_reduction <add>, %35, %cst_9 [1] : vector<8x8xf32> to vector<8xf32>
    %37 = vector.shape_cast %36 : vector<8xf32> to vector<8x1xf32>
    %38 = tpu.reciprocal %37 {approx = true} : vector<8x1xf32> -> vector<8x1xf32>
    %39 = vector.broadcast %38 : vector<8x1xf32> to vector<8x8xf32>
    %40 = arith.mulf %35, %39 : vector<8x8xf32>
    %41 = arith.truncf %40 : vector<8x8xf32> to vector<8x8xbf16>
    %42 = arith.truncf %25 : vector<8x8xf32> to vector<8x8xbf16>
    %cst_10 = arith.constant dense<0.000000e+00> : vector<8x8xf32>
    %43 = tpu.matmul %41, %42, %cst_10 {dimension_numbers = #tpu.dot_dimension_numbers<[1], [0], [0], [1], [0, 0, 1, 1], [], []>} : vector<8x8xbf16>, vector<8x8xbf16>, vector<8x8xf32> -> vector<8x8xf32>
    %44 = vector.extract_strided_slice %1 {offsets = [0, 16], sizes = [8, 8], strides = [1, 1]} : vector<8x96xf32> to vector<8x8xf32>
    %45 = vector.extract_strided_slice %1 {offsets = [0, 48], sizes = [8, 8], strides = [1, 1]} : vector<8x96xf32> to vector<8x8xf32>
    %46 = vector.extract_strided_slice %1 {offsets = [0, 80], sizes = [8, 8], strides = [1, 1]} : vector<8x96xf32> to vector<8x8xf32>
    %47 = arith.truncf %44 : vector<8x8xf32> to vector<8x8xbf16>
    %48 = arith.truncf %45 : vector<8x8xf32> to vector<8x8xbf16>
    %cst_11 = arith.constant dense<0.000000e+00> : vector<8x8xf32>
    %49 = tpu.matmul %47, %48, %cst_11 {dimension_numbers = #tpu.dot_dimension_numbers<[1], [1], [0], [0], [0, 0, 1, 0], [], []>} : vector<8x8xbf16>, vector<8x8xbf16>, vector<8x8xf32> -> vector<8x8xf32>
    %cst_12 = arith.constant 0.353553385 : f32
    %50 = vector.broadcast %cst_12 : f32 to vector<8x8xf32>
    %51 = arith.mulf %49, %50 : vector<8x8xf32>
    %cst_13 = arith.constant dense<0xFF800000> : vector<8xf32>
    %52 = vector.multi_reduction <maximumf>, %51, %cst_13 [1] : vector<8x8xf32> to vector<8xf32>
    %53 = vector.shape_cast %52 : vector<8xf32> to vector<8x1xf32>
    %54 = vector.broadcast %53 : vector<8x1xf32> to vector<8x8xf32>
    %55 = arith.subf %51, %54 : vector<8x8xf32>
    %56 = math.exp %55 : vector<8x8xf32>
    %cst_14 = arith.constant dense<0.000000e+00> : vector<8xf32>
    %57 = vector.multi_reduction <add>, %56, %cst_14 [1] : vector<8x8xf32> to vector<8xf32>
    %58 = vector.shape_cast %57 : vector<8xf32> to vector<8x1xf32>
    %59 = tpu.reciprocal %58 {approx = true} : vector<8x1xf32> -> vector<8x1xf32>
    %60 = vector.broadcast %59 : vector<8x1xf32> to vector<8x8xf32>
    %61 = arith.mulf %56, %60 : vector<8x8xf32>
    %62 = arith.truncf %61 : vector<8x8xf32> to vector<8x8xbf16>
    %63 = arith.truncf %46 : vector<8x8xf32> to vector<8x8xbf16>
    %cst_15 = arith.constant dense<0.000000e+00> : vector<8x8xf32>
    %64 = tpu.matmul %62, %63, %cst_15 {dimension_numbers = #tpu.dot_dimension_numbers<[1], [0], [0], [1], [0, 0, 1, 1], [], []>} : vector<8x8xbf16>, vector<8x8xbf16>, vector<8x8xf32> -> vector<8x8xf32>
    %65 = vector.extract_strided_slice %1 {offsets = [0, 24], sizes = [8, 8], strides = [1, 1]} : vector<8x96xf32> to vector<8x8xf32>
    %66 = vector.extract_strided_slice %1 {offsets = [0, 56], sizes = [8, 8], strides = [1, 1]} : vector<8x96xf32> to vector<8x8xf32>
    %67 = vector.extract_strided_slice %1 {offsets = [0, 88], sizes = [8, 8], strides = [1, 1]} : vector<8x96xf32> to vector<8x8xf32>
    %68 = arith.truncf %65 : vector<8x8xf32> to vector<8x8xbf16>
    %69 = arith.truncf %66 : vector<8x8xf32> to vector<8x8xbf16>
    %cst_16 = arith.constant dense<0.000000e+00> : vector<8x8xf32>
    %70 = tpu.matmul %68, %69, %cst_16 {dimension_numbers = #tpu.dot_dimension_numbers<[1], [1], [0], [0], [0, 0, 1, 0], [], []>} : vector<8x8xbf16>, vector<8x8xbf16>, vector<8x8xf32> -> vector<8x8xf32>
    %cst_17 = arith.constant 0.353553385 : f32
    %71 = vector.broadcast %cst_17 : f32 to vector<8x8xf32>
    %72 = arith.mulf %70, %71 : vector<8x8xf32>
    %cst_18 = arith.constant dense<0xFF800000> : vector<8xf32>
    %73 = vector.multi_reduction <maximumf>, %72, %cst_18 [1] : vector<8x8xf32> to vector<8xf32>
    %74 = vector.shape_cast %73 : vector<8xf32> to vector<8x1xf32>
    %75 = vector.broadcast %74 : vector<8x1xf32> to vector<8x8xf32>
    %76 = arith.subf %72, %75 : vector<8x8xf32>
    %77 = math.exp %76 : vector<8x8xf32>
    %cst_19 = arith.constant dense<0.000000e+00> : vector<8xf32>
    %78 = vector.multi_reduction <add>, %77, %cst_19 [1] : vector<8x8xf32> to vector<8xf32>
    %79 = vector.shape_cast %78 : vector<8xf32> to vector<8x1xf32>
    %80 = tpu.reciprocal %79 {approx = true} : vector<8x1xf32> -> vector<8x1xf32>
    %81 = vector.broadcast %80 : vector<8x1xf32> to vector<8x8xf32>
    %82 = arith.mulf %77, %81 : vector<8x8xf32>
    %83 = arith.truncf %82 : vector<8x8xf32> to vector<8x8xbf16>
    %84 = arith.truncf %67 : vector<8x8xf32> to vector<8x8xbf16>
    %cst_20 = arith.constant dense<0.000000e+00> : vector<8x8xf32>
    %85 = tpu.matmul %83, %84, %cst_20 {dimension_numbers = #tpu.dot_dimension_numbers<[1], [0], [0], [1], [0, 0, 1, 1], [], []>} : vector<8x8xbf16>, vector<8x8xbf16>, vector<8x8xf32> -> vector<8x8xf32>
    %86 = tpu.concatenate %22, %43, %64, %85 in 1 : vector<8x8xf32>, vector<8x8xf32>, vector<8x8xf32>, vector<8x8xf32> -> vector<8x32xf32>
    %c0_21 = arith.constant 0 : index
    %c0_22 = arith.constant 0 : index
    %c0_23 = arith.constant 0 : index
    %87 = vector.load %arg2[%c0_21, %c0_22, %c0_23] : memref<1x8x32xf32, #tpu.memory_space<vmem>>, vector<1x8x32xf32>
    %88 = vector.shape_cast %87 : vector<1x8x32xf32> to vector<8x32xf32>
    %89 = vector.shape_cast %86 : vector<8x32xf32> to vector<1x8x32xf32>
    tpu.vector_store %arg2[%c0_21, %c0_22, %c0_23], %89 {strides = array<i32>} : memref<1x8x32xf32, #tpu.memory_space<vmem>>, vector<1x8x32xf32>,
    return
  }
  func.func @transform_0(%arg0: i32) -> (i32, i32, i32) {
    %c0_i32 = arith.constant 0 : i32
    %c0_i32_0 = arith.constant 0 : i32
    %c0_i32_1 = arith.constant 0 : i32
    return %arg0, %c0_i32, %c0_i32_0 : i32, i32, i32
  }
  func.func @transform_1(%arg0: i32) -> (i32, i32, i32) {
    %c0_i32 = arith.constant 0 : i32
    %c0_i32_0 = arith.constant 0 : i32
    %c0_i32_1 = arith.constant 0 : i32
    return %arg0, %c0_i32, %c0_i32_0 : i32, i32, i32
  }
}

module attributes {stable_mosaic.version = 11 : i64} {
  func.func @_ln_linear_kernel(%arg0: i32, %arg1: memref<16x32xf32, #tpu.memory_space<vmem>>, %arg2: memref<1x32xf32, #tpu.memory_space<vmem>>, %arg3: memref<1x32xf32, #tpu.memory_space<vmem>>, %arg4: memref<32x96xbf16, #tpu.memory_space<vmem>>, %arg5: memref<1x96xf32, #tpu.memory_space<vmem>>, %arg6: memref<16x96xf32, #tpu.memory_space<vmem>>) attributes {dimension_semantics = [#tpu.dimension_semantics<parallel>], iteration_bounds = array<i64: 1>, scalar_prefetch = 0 : i64, scratch_operands = 0 : i64, tpu.core_type = #tpu.core_type<tc>, window_params = [{transform_indices = @transform_0, window_bounds = array<i64: 16, 32>}, {pipeline_mode = #tpu.pipeline_mode<synchronous>, transform_indices = @transform_1, window_bounds = array<i64: 1, 32>}, {pipeline_mode = #tpu.pipeline_mode<synchronous>, transform_indices = @transform_2, window_bounds = array<i64: 1, 32>}, {pipeline_mode = #tpu.pipeline_mode<synchronous>, transform_indices = @transform_3, window_bounds = array<i64: 32, 96>}, {pipeline_mode = #tpu.pipeline_mode<synchronous>, transform_indices = @transform_4, window_bounds = array<i64: 1, 96>}, {transform_indices = @transform_5, window_bounds = array<i64: 16, 96>}]} {
    %c0 = arith.constant 0 : index
    %c0_0 = arith.constant 0 : index
    %0 = vector.load %arg1[%c0, %c0_0] : memref<16x32xf32, #tpu.memory_space<vmem>>, vector<16x32xf32>
    %cst = arith.constant dense<0.000000e+00> : vector<16xf32>
    %1 = vector.multi_reduction <add>, %0, %cst [1] : vector<16x32xf32> to vector<16xf32>
    %2 = vector.shape_cast %1 : vector<16xf32> to vector<16x1xf32>
    %cst_1 = arith.constant 3.200000e+01 : f32
    %3 = vector.broadcast %cst_1 : f32 to vector<16x1xf32>
    %4 = arith.divf %2, %3 : vector<16x1xf32>
    %5 = vector.broadcast %4 : vector<16x1xf32> to vector<16x32xf32>
    %6 = arith.subf %0, %5 : vector<16x32xf32>
    %7 = arith.mulf %6, %6 : vector<16x32xf32>
    %cst_2 = arith.constant dense<0.000000e+00> : vector<16xf32>
    %8 = vector.multi_reduction <add>, %7, %cst_2 [1] : vector<16x32xf32> to vector<16xf32>
    %9 = vector.shape_cast %8 : vector<16xf32> to vector<16x1xf32>
    %cst_3 = arith.constant 3.200000e+01 : f32
    %10 = vector.broadcast %cst_3 : f32 to vector<16x1xf32>
    %11 = arith.divf %9, %10 : vector<16x1xf32>
    %12 = vector.broadcast %4 : vector<16x1xf32> to vector<16x32xf32>
    %13 = arith.subf %0, %12 : vector<16x32xf32>
    %cst_4 = arith.constant 9.99999974E-6 : f32
    %14 = vector.broadcast %cst_4 : f32 to vector<16x1xf32>
    %15 = arith.addf %11, %14 : vector<16x1xf32>
    %16 = math.rsqrt %15 : vector<16x1xf32>
    %17 = vector.broadcast %16 : vector<16x1xf32> to vector<16x32xf32>
    %18 = arith.mulf %13, %17 : vector<16x32xf32>
    %c0_5 = arith.constant 0 : index
    %c0_6 = arith.constant 0 : index
    %19 = vector.load %arg2[%c0_5, %c0_6] : memref<1x32xf32, #tpu.memory_space<vmem>>, vector<1x32xf32>
    %20 = vector.broadcast %19 : vector<1x32xf32> to vector<16x32xf32>
    %21 = arith.mulf %18, %20 : vector<16x32xf32>
    %c0_7 = arith.constant 0 : index
    %c0_8 = arith.constant 0 : index
    %22 = vector.load %arg3[%c0_7, %c0_8] : memref<1x32xf32, #tpu.memory_space<vmem>>, vector<1x32xf32>
    %23 = vector.broadcast %22 : vector<1x32xf32> to vector<16x32xf32>
    %24 = arith.addf %21, %23 : vector<16x32xf32>
    %25 = arith.truncf %24 : vector<16x32xf32> to vector<16x32xbf16>
    %c0_9 = arith.constant 0 : index
    %c0_10 = arith.constant 0 : index
    %26 = vector.load %arg4[%c0_9, %c0_10] : memref<32x96xbf16, #tpu.memory_space<vmem>>, vector<32x96xbf16>
    %cst_11 = arith.constant dense<0.000000e+00> : vector<16x96xf32>
    %27 = tpu.matmul %25, %26, %cst_11 {dimension_numbers = #tpu.dot_dimension_numbers<[1], [0], [0], [1], [0, 0, 1, 1], [], []>} : vector<16x32xbf16>, vector<32x96xbf16>, vector<16x96xf32> -> vector<16x96xf32>
    %c0_12 = arith.constant 0 : index
    %c0_13 = arith.constant 0 : index
    %28 = vector.load %arg5[%c0_12, %c0_13] : memref<1x96xf32, #tpu.memory_space<vmem>>, vector<1x96xf32>
    %29 = vector.broadcast %28 : vector<1x96xf32> to vector<16x96xf32>
    %30 = arith.addf %27, %29 : vector<16x96xf32>
    %c0_14 = arith.constant 0 : index
    %c0_15 = arith.constant 0 : index
    %31 = vector.load %arg6[%c0_14, %c0_15] : memref<16x96xf32, #tpu.memory_space<vmem>>, vector<16x96xf32>
    tpu.vector_store %arg6[%c0_14, %c0_15], %30 {strides = array<i32>} : memref<16x96xf32, #tpu.memory_space<vmem>>, vector<16x96xf32>,
    return
  }
  func.func @transform_0(%arg0: i32) -> (i32, i32) {
    %c0_i32 = arith.constant 0 : i32
    %c0_i32_0 = arith.constant 0 : i32
    return %arg0, %c0_i32 : i32, i32
  }
  func.func @transform_1(%arg0: i32) -> (i32, i32) {
    %c0_i32 = arith.constant 0 : i32
    %c0_i32_0 = arith.constant 0 : i32
    %c0_i32_1 = arith.constant 0 : i32
    return %c0_i32, %c0_i32_0 : i32, i32
  }
  func.func @transform_2(%arg0: i32) -> (i32, i32) {
    %c0_i32 = arith.constant 0 : i32
    %c0_i32_0 = arith.constant 0 : i32
    %c0_i32_1 = arith.constant 0 : i32
    return %c0_i32, %c0_i32_0 : i32, i32
  }
  func.func @transform_3(%arg0: i32) -> (i32, i32) {
    %c0_i32 = arith.constant 0 : i32
    %c0_i32_0 = arith.constant 0 : i32
    %c0_i32_1 = arith.constant 0 : i32
    return %c0_i32, %c0_i32_0 : i32, i32
  }
  func.func @transform_4(%arg0: i32) -> (i32, i32) {
    %c0_i32 = arith.constant 0 : i32
    %c0_i32_0 = arith.constant 0 : i32
    %c0_i32_1 = arith.constant 0 : i32
    return %c0_i32, %c0_i32_0 : i32, i32
  }
  func.func @transform_5(%arg0: i32) -> (i32, i32) {
    %c0_i32 = arith.constant 0 : i32
    %c0_i32_0 = arith.constant 0 : i32
    return %arg0, %c0_i32 : i32, i32
  }
}

module attributes {stable_mosaic.version = 11 : i64} {
  func.func @_ln_mlp_residual_kernel(%arg0: i32, %arg1: memref<16x32xf32, #tpu.memory_space<vmem>>, %arg2: memref<1x32xf32, #tpu.memory_space<vmem>>, %arg3: memref<1x32xf32, #tpu.memory_space<vmem>>, %arg4: memref<32x96xbf16, #tpu.memory_space<vmem>>, %arg5: memref<1x96xf32, #tpu.memory_space<vmem>>, %arg6: memref<96x32xbf16, #tpu.memory_space<vmem>>, %arg7: memref<1x32xf32, #tpu.memory_space<vmem>>, %arg8: memref<16x32xf32, #tpu.memory_space<vmem>>) attributes {dimension_semantics = [#tpu.dimension_semantics<parallel>], iteration_bounds = array<i64: 1>, scalar_prefetch = 0 : i64, scratch_operands = 0 : i64, tpu.core_type = #tpu.core_type<tc>, window_params = [{transform_indices = @transform_0, window_bounds = array<i64: 16, 32>}, {pipeline_mode = #tpu.pipeline_mode<synchronous>, transform_indices = @transform_1, window_bounds = array<i64: 1, 32>}, {pipeline_mode = #tpu.pipeline_mode<synchronous>, transform_indices = @transform_2, window_bounds = array<i64: 1, 32>}, {pipeline_mode = #tpu.pipeline_mode<synchronous>, transform_indices = @transform_3, window_bounds = array<i64: 32, 96>}, {pipeline_mode = #tpu.pipeline_mode<synchronous>, transform_indices = @transform_4, window_bounds = array<i64: 1, 96>}, {pipeline_mode = #tpu.pipeline_mode<synchronous>, transform_indices = @transform_5, window_bounds = array<i64: 96, 32>}, {pipeline_mode = #tpu.pipeline_mode<synchronous>, transform_indices = @transform_6, window_bounds = array<i64: 1, 32>}, {transform_indices = @transform_7, window_bounds = array<i64: 16, 32>}]} {
    %c0 = arith.constant 0 : index
    %c0_0 = arith.constant 0 : index
    %0 = vector.load %arg1[%c0, %c0_0] : memref<16x32xf32, #tpu.memory_space<vmem>>, vector<16x32xf32>
    %cst = arith.constant dense<0.000000e+00> : vector<16xf32>
    %1 = vector.multi_reduction <add>, %0, %cst [1] : vector<16x32xf32> to vector<16xf32>
    %2 = vector.shape_cast %1 : vector<16xf32> to vector<16x1xf32>
    %cst_1 = arith.constant 3.200000e+01 : f32
    %3 = vector.broadcast %cst_1 : f32 to vector<16x1xf32>
    %4 = arith.divf %2, %3 : vector<16x1xf32>
    %5 = vector.broadcast %4 : vector<16x1xf32> to vector<16x32xf32>
    %6 = arith.subf %0, %5 : vector<16x32xf32>
    %7 = arith.mulf %6, %6 : vector<16x32xf32>
    %cst_2 = arith.constant dense<0.000000e+00> : vector<16xf32>
    %8 = vector.multi_reduction <add>, %7, %cst_2 [1] : vector<16x32xf32> to vector<16xf32>
    %9 = vector.shape_cast %8 : vector<16xf32> to vector<16x1xf32>
    %cst_3 = arith.constant 3.200000e+01 : f32
    %10 = vector.broadcast %cst_3 : f32 to vector<16x1xf32>
    %11 = arith.divf %9, %10 : vector<16x1xf32>
    %12 = vector.broadcast %4 : vector<16x1xf32> to vector<16x32xf32>
    %13 = arith.subf %0, %12 : vector<16x32xf32>
    %cst_4 = arith.constant 9.99999974E-6 : f32
    %14 = vector.broadcast %cst_4 : f32 to vector<16x1xf32>
    %15 = arith.addf %11, %14 : vector<16x1xf32>
    %16 = math.rsqrt %15 : vector<16x1xf32>
    %17 = vector.broadcast %16 : vector<16x1xf32> to vector<16x32xf32>
    %18 = arith.mulf %13, %17 : vector<16x32xf32>
    %c0_5 = arith.constant 0 : index
    %c0_6 = arith.constant 0 : index
    %19 = vector.load %arg2[%c0_5, %c0_6] : memref<1x32xf32, #tpu.memory_space<vmem>>, vector<1x32xf32>
    %20 = vector.broadcast %19 : vector<1x32xf32> to vector<16x32xf32>
    %21 = arith.mulf %18, %20 : vector<16x32xf32>
    %c0_7 = arith.constant 0 : index
    %c0_8 = arith.constant 0 : index
    %22 = vector.load %arg3[%c0_7, %c0_8] : memref<1x32xf32, #tpu.memory_space<vmem>>, vector<1x32xf32>
    %23 = vector.broadcast %22 : vector<1x32xf32> to vector<16x32xf32>
    %24 = arith.addf %21, %23 : vector<16x32xf32>
    %25 = arith.truncf %24 : vector<16x32xf32> to vector<16x32xbf16>
    %c0_9 = arith.constant 0 : index
    %c0_10 = arith.constant 0 : index
    %26 = vector.load %arg4[%c0_9, %c0_10] : memref<32x96xbf16, #tpu.memory_space<vmem>>, vector<32x96xbf16>
    %cst_11 = arith.constant dense<0.000000e+00> : vector<16x96xf32>
    %27 = tpu.matmul %25, %26, %cst_11 {dimension_numbers = #tpu.dot_dimension_numbers<[1], [0], [0], [1], [0, 0, 1, 1], [], []>} : vector<16x32xbf16>, vector<32x96xbf16>, vector<16x96xf32> -> vector<16x96xf32>
    %c0_12 = arith.constant 0 : index
    %c0_13 = arith.constant 0 : index
    %28 = vector.load %arg5[%c0_12, %c0_13] : memref<1x96xf32, #tpu.memory_space<vmem>>, vector<1x96xf32>
    %29 = vector.broadcast %28 : vector<1x96xf32> to vector<16x96xf32>
    %30 = arith.addf %27, %29 : vector<16x96xf32>
    %cst_14 = arith.constant 5.000000e-01 : f32
    %31 = vector.broadcast %cst_14 : f32 to vector<16x96xf32>
    %32 = arith.mulf %31, %30 : vector<16x96xf32>
    %cst_15 = arith.constant 0.707106769 : f32
    %33 = vector.broadcast %cst_15 : f32 to vector<16x96xf32>
    %34 = arith.mulf %30, %33 : vector<16x96xf32>
    %35 = math.erf %34 : vector<16x96xf32>
    %cst_16 = arith.constant 1.000000e+00 : f32
    %36 = vector.broadcast %cst_16 : f32 to vector<16x96xf32>
    %37 = arith.addf %36, %35 : vector<16x96xf32>
    %38 = arith.mulf %32, %37 : vector<16x96xf32>
    %39 = arith.truncf %38 : vector<16x96xf32> to vector<16x96xbf16>
    %c0_17 = arith.constant 0 : index
    %c0_18 = arith.constant 0 : index
    %40 = vector.load %arg6[%c0_17, %c0_18] : memref<96x32xbf16, #tpu.memory_space<vmem>>, vector<96x32xbf16>
    %cst_19 = arith.constant dense<0.000000e+00> : vector<16x32xf32>
    %41 = tpu.matmul %39, %40, %cst_19 {dimension_numbers = #tpu.dot_dimension_numbers<[1], [0], [0], [1], [0, 0, 1, 1], [], []>} : vector<16x96xbf16>, vector<96x32xbf16>, vector<16x32xf32> -> vector<16x32xf32>
    %c0_20 = arith.constant 0 : index
    %c0_21 = arith.constant 0 : index
    %42 = vector.load %arg7[%c0_20, %c0_21] : memref<1x32xf32, #tpu.memory_space<vmem>>, vector<1x32xf32>
    %43 = vector.broadcast %42 : vector<1x32xf32> to vector<16x32xf32>
    %44 = arith.addf %41, %43 : vector<16x32xf32>
    %45 = arith.addf %0, %44 : vector<16x32xf32>
    %c0_22 = arith.constant 0 : index
    %c0_23 = arith.constant 0 : index
    %46 = vector.load %arg8[%c0_22, %c0_23] : memref<16x32xf32, #tpu.memory_space<vmem>>, vector<16x32xf32>
    tpu.vector_store %arg8[%c0_22, %c0_23], %45 {strides = array<i32>} : memref<16x32xf32, #tpu.memory_space<vmem>>, vector<16x32xf32>,
    return
  }
  func.func @transform_0(%arg0: i32) -> (i32, i32) {
    %c0_i32 = arith.constant 0 : i32
    %c0_i32_0 = arith.constant 0 : i32
    return %arg0, %c0_i32 : i32, i32
  }
  func.func @transform_1(%arg0: i32) -> (i32, i32) {
    %c0_i32 = arith.constant 0 : i32
    %c0_i32_0 = arith.constant 0 : i32
    %c0_i32_1 = arith.constant 0 : i32
    return %c0_i32, %c0_i32_0 : i32, i32
  }
  func.func @transform_2(%arg0: i32) -> (i32, i32) {
    %c0_i32 = arith.constant 0 : i32
    %c0_i32_0 = arith.constant 0 : i32
    %c0_i32_1 = arith.constant 0 : i32
    return %c0_i32, %c0_i32_0 : i32, i32
  }
  func.func @transform_3(%arg0: i32) -> (i32, i32) {
    %c0_i32 = arith.constant 0 : i32
    %c0_i32_0 = arith.constant 0 : i32
    %c0_i32_1 = arith.constant 0 : i32
    return %c0_i32, %c0_i32_0 : i32, i32
  }
  func.func @transform_4(%arg0: i32) -> (i32, i32) {
    %c0_i32 = arith.constant 0 : i32
    %c0_i32_0 = arith.constant 0 : i32
    %c0_i32_1 = arith.constant 0 : i32
    return %c0_i32, %c0_i32_0 : i32, i32
  }
  func.func @transform_5(%arg0: i32) -> (i32, i32) {
    %c0_i32 = arith.constant 0 : i32
    %c0_i32_0 = arith.constant 0 : i32
    %c0_i32_1 = arith.constant 0 : i32
    return %c0_i32, %c0_i32_0 : i32, i32
  }
  func.func @transform_6(%arg0: i32) -> (i32, i32) {
    %c0_i32 = arith.constant 0 : i32
    %c0_i32_0 = arith.constant 0 : i32
    %c0_i32_1 = arith.constant 0 : i32
    return %c0_i32, %c0_i32_0 : i32, i32
  }
  func.func @transform_7(%arg0: i32) -> (i32, i32) {
    %c0_i32 = arith.constant 0 : i32
    %c0_i32_0 = arith.constant 0 : i32
    return %arg0, %c0_i32 : i32, i32
  }
}

module attributes {stable_mosaic.version = 11 : i64} {
  func.func @_logsoftmax_kernel(%arg0: i32, %arg1: i32, %arg2: memref<16x32xf32, #tpu.memory_space<vmem>>, %arg3: memref<64x32xbf16, #tpu.memory_space<vmem>>, %arg4: memref<16x1xf32, #tpu.memory_space<vmem>>, %arg5: memref<16x64xf32, #tpu.memory_space<vmem>>) attributes {dimension_semantics = [#tpu.dimension_semantics<parallel>, #tpu.dimension_semantics<parallel>], iteration_bounds = array<i64: 1, 1>, scalar_prefetch = 0 : i64, scratch_operands = 0 : i64, tpu.core_type = #tpu.core_type<tc>, window_params = [{transform_indices = @transform_0, window_bounds = array<i64: 16, 32>}, {transform_indices = @transform_1, window_bounds = array<i64: 64, 32>}, {transform_indices = @transform_2, window_bounds = array<i64: 16, 1>}, {transform_indices = @transform_3, window_bounds = array<i64: 16, 64>}]} {
    %c0 = arith.constant 0 : index
    %c0_0 = arith.constant 0 : index
    %0 = vector.load %arg2[%c0, %c0_0] : memref<16x32xf32, #tpu.memory_space<vmem>>, vector<16x32xf32>
    %1 = arith.truncf %0 : vector<16x32xf32> to vector<16x32xbf16>
    %c0_1 = arith.constant 0 : index
    %c0_2 = arith.constant 0 : index
    %2 = vector.load %arg3[%c0_1, %c0_2] : memref<64x32xbf16, #tpu.memory_space<vmem>>, vector<64x32xbf16>
    %cst = arith.constant dense<0.000000e+00> : vector<16x64xf32>
    %3 = tpu.matmul %1, %2, %cst {dimension_numbers = #tpu.dot_dimension_numbers<[1], [1], [0], [0], [0, 0, 1, 0], [], []>} : vector<16x32xbf16>, vector<64x32xbf16>, vector<16x64xf32> -> vector<16x64xf32>
    %c0_3 = arith.constant 0 : index
    %c0_4 = arith.constant 0 : index
    %4 = vector.load %arg4[%c0_3, %c0_4] : memref<16x1xf32, #tpu.memory_space<vmem>>, vector<16x1xf32>
    %5 = vector.broadcast %4 : vector<16x1xf32> to vector<16x64xf32>
    %6 = arith.subf %3, %5 : vector<16x64xf32>
    %c0_5 = arith.constant 0 : index
    %c0_6 = arith.constant 0 : index
    %7 = vector.load %arg5[%c0_5, %c0_6] : memref<16x64xf32, #tpu.memory_space<vmem>>, vector<16x64xf32>
    tpu.vector_store %arg5[%c0_5, %c0_6], %6 {strides = array<i32>} : memref<16x64xf32, #tpu.memory_space<vmem>>, vector<16x64xf32>,
    return
  }
  func.func @transform_0(%arg0: i32, %arg1: i32) -> (i32, i32) {
    %c0_i32 = arith.constant 0 : i32
    %c0_i32_0 = arith.constant 0 : i32
    return %arg0, %c0_i32 : i32, i32
  }
  func.func @transform_1(%arg0: i32, %arg1: i32) -> (i32, i32) {
    %c0_i32 = arith.constant 0 : i32
    %c0_i32_0 = arith.constant 0 : i32
    return %arg1, %c0_i32 : i32, i32
  }
  func.func @transform_2(%arg0: i32, %arg1: i32) -> (i32, i32) {
    %c0_i32 = arith.constant 0 : i32
    %c0_i32_0 = arith.constant 0 : i32
    return %arg0, %c0_i32 : i32, i32
  }
  func.func @transform_3(%arg0: i32, %arg1: i32) -> (i32, i32) {
    %c0_i32 = arith.constant 0 : i32
    return %arg0, %arg1 : i32, i32
  }
}

module attributes {stable_mosaic.version = 11 : i64} {
  func.func @_lse_kernel(%arg0: i32, %arg1: i32, %arg2: memref<16x32xf32, #tpu.memory_space<vmem>>, %arg3: memref<64x32xbf16, #tpu.memory_space<vmem>>, %arg4: memref<16x1xf32, #tpu.memory_space<vmem>>, %arg5: memref<16x1xf32, #tpu.memory_space<vmem>>, %arg6: memref<16x1xf32, #tpu.memory_space<vmem>>) attributes {dimension_semantics = [#tpu.dimension_semantics<parallel>, #tpu.dimension_semantics<arbitrary>], iteration_bounds = array<i64: 1, 1>, scalar_prefetch = 0 : i64, scratch_operands = 2 : i64, tpu.core_type = #tpu.core_type<tc>, window_params = [{transform_indices = @transform_0, window_bounds = array<i64: 16, 32>}, {transform_indices = @transform_1, window_bounds = array<i64: 64, 32>}, {transform_indices = @transform_2, window_bounds = array<i64: 16, 1>}]} {
    %c0_i32 = arith.constant 0 : i32
    %0 = arith.cmpi eq, %arg1, %c0_i32 : i32
    %1 = arith.extui %0 : i1 to i32
    %c0_i32_0 = arith.constant 0 : i32
    %2 = arith.cmpi ne, %1, %c0_i32_0 : i32
    scf.if %2 {
      %cst_16 = arith.constant 0xFF800000 : f32
      %26 = vector.broadcast %cst_16 : f32 to vector<16x1xf32>
      %c0_17 = arith.constant 0 : index
      %c0_18 = arith.constant 0 : index
      %27 = vector.load %arg5[%c0_17, %c0_18] : memref<16x1xf32, #tpu.memory_space<vmem>>, vector<16x1xf32>
      tpu.vector_store %arg5[%c0_17, %c0_18], %26 {strides = array<i32>} : memref<16x1xf32, #tpu.memory_space<vmem>>, vector<16x1xf32>,
      %cst_19 = arith.constant 0.000000e+00 : f32
      %28 = vector.broadcast %cst_19 : f32 to vector<16x1xf32>
      %c0_20 = arith.constant 0 : index
      %c0_21 = arith.constant 0 : index
      %29 = vector.load %arg6[%c0_20, %c0_21] : memref<16x1xf32, #tpu.memory_space<vmem>>, vector<16x1xf32>
      tpu.vector_store %arg6[%c0_20, %c0_21], %28 {strides = array<i32>} : memref<16x1xf32, #tpu.memory_space<vmem>>, vector<16x1xf32>,
    } else {
    }
    %c0 = arith.constant 0 : index
    %c0_1 = arith.constant 0 : index
    %3 = vector.load %arg2[%c0, %c0_1] : memref<16x32xf32, #tpu.memory_space<vmem>>, vector<16x32xf32>
    %4 = arith.truncf %3 : vector<16x32xf32> to vector<16x32xbf16>
    %c0_2 = arith.constant 0 : index
    %c0_3 = arith.constant 0 : index
    %5 = vector.load %arg3[%c0_2, %c0_3] : memref<64x32xbf16, #tpu.memory_space<vmem>>, vector<64x32xbf16>
    %cst = arith.constant dense<0.000000e+00> : vector<16x64xf32>
    %6 = tpu.matmul %4, %5, %cst {dimension_numbers = #tpu.dot_dimension_numbers<[1], [1], [0], [0], [0, 0, 1, 0], [], []>} : vector<16x32xbf16>, vector<64x32xbf16>, vector<16x64xf32> -> vector<16x64xf32>
    %c0_4 = arith.constant 0 : index
    %c0_5 = arith.constant 0 : index
    %7 = vector.load %arg5[%c0_4, %c0_5] : memref<16x1xf32, #tpu.memory_space<vmem>>, vector<16x1xf32>
    %cst_6 = arith.constant dense<0xFF800000> : vector<16xf32>
    %8 = vector.multi_reduction <maximumf>, %6, %cst_6 [1] : vector<16x64xf32> to vector<16xf32>
    %9 = vector.shape_cast %8 : vector<16xf32> to vector<16x1xf32>
    %10 = arith.maximumf %7, %9 : vector<16x1xf32>
    %11 = arith.subf %7, %10 : vector<16x1xf32>
    %12 = math.exp %11 : vector<16x1xf32>
    %c0_7 = arith.constant 0 : index
    %c0_8 = arith.constant 0 : index
    %13 = vector.load %arg6[%c0_7, %c0_8] : memref<16x1xf32, #tpu.memory_space<vmem>>, vector<16x1xf32>
    %14 = arith.mulf %12, %13 : vector<16x1xf32>
    %15 = vector.broadcast %10 : vector<16x1xf32> to vector<16x64xf32>
    %16 = arith.subf %6, %15 : vector<16x64xf32>
    %17 = math.exp %16 : vector<16x64xf32>
    %cst_9 = arith.constant dense<0.000000e+00> : vector<16xf32>
    %18 = vector.multi_reduction <add>, %17, %cst_9 [1] : vector<16x64xf32> to vector<16xf32>
    %19 = vector.shape_cast %18 : vector<16xf32> to vector<16x1xf32>
    %20 = arith.addf %14, %19 : vector<16x1xf32>
    %c0_10 = arith.constant 0 : index
    %c0_11 = arith.constant 0 : index
    %21 = vector.load %arg6[%c0_10, %c0_11] : memref<16x1xf32, #tpu.memory_space<vmem>>, vector<16x1xf32>
    tpu.vector_store %arg6[%c0_10, %c0_11], %20 {strides = array<i32>} : memref<16x1xf32, #tpu.memory_space<vmem>>, vector<16x1xf32>,
    %c0_12 = arith.constant 0 : index
    %c0_13 = arith.constant 0 : index
    %22 = vector.load %arg5[%c0_12, %c0_13] : memref<16x1xf32, #tpu.memory_space<vmem>>, vector<16x1xf32>
    tpu.vector_store %arg5[%c0_12, %c0_13], %10 {strides = array<i32>} : memref<16x1xf32, #tpu.memory_space<vmem>>, vector<16x1xf32>,
    %c0_i32_14 = arith.constant 0 : i32
    %23 = arith.cmpi eq, %arg1, %c0_i32_14 : i32
    %24 = arith.extui %23 : i1 to i32
    %c0_i32_15 = arith.constant 0 : i32
    %25 = arith.cmpi ne, %24, %c0_i32_15 : i32
    scf.if %25 {
      %c0_16 = arith.constant 0 : index
      %c0_17 = arith.constant 0 : index
      %26 = vector.load %arg5[%c0_16, %c0_17] : memref<16x1xf32, #tpu.memory_space<vmem>>, vector<16x1xf32>
      %c0_18 = arith.constant 0 : index
      %c0_19 = arith.constant 0 : index
      %27 = vector.load %arg6[%c0_18, %c0_19] : memref<16x1xf32, #tpu.memory_space<vmem>>, vector<16x1xf32>
      %28 = math.log %27 : vector<16x1xf32>
      %29 = arith.addf %26, %28 : vector<16x1xf32>
      %c0_20 = arith.constant 0 : index
      %c0_21 = arith.constant 0 : index
      %30 = vector.load %arg4[%c0_20, %c0_21] : memref<16x1xf32, #tpu.memory_space<vmem>>, vector<16x1xf32>
      tpu.vector_store %arg4[%c0_20, %c0_21], %29 {strides = array<i32>} : memref<16x1xf32, #tpu.memory_space<vmem>>, vector<16x1xf32>,
    } else {
    }
    return
  }
  func.func @transform_0(%arg0: i32, %arg1: i32) -> (i32, i32) {
    %c0_i32 = arith.constant 0 : i32
    %c0_i32_0 = arith.constant 0 : i32
    return %arg0, %c0_i32 : i32, i32
  }
  func.func @transform_1(%arg0: i32, %arg1: i32) -> (i32, i32) {
    %c0_i32 = arith.constant 0 : i32
    %c0_i32_0 = arith.constant 0 : i32
    return %arg1, %c0_i32 : i32, i32
  }
  func.func @transform_2(%arg0: i32, %arg1: i32) -> (i32, i32) {
    %c0_i32 = arith.constant 0 : i32
    %c0_i32_0 = arith.constant 0 : i32
    return %arg0, %c0_i32 : i32, i32
  }
}

</mosaic_0001>

<bundles_post_ra>
// kernel: transformer_forward.18
= control target key start
LH: loop header
LB: loop body
LE: loop exit
PB: predicated region body
PF: predicated region fallthrough
CT: control target
= control target key end

     0   :  { %v118_v0 = vmov 0.0   ;;  %vm119_vm0 = vmmov 0   ;;  %vm44_vm1 = vcmask 261120   ;;  %s175_s1 = inlined_call_operand.vmem [shape: bf16[32,32], index: 1, kind: input, shape index: {}]   ;;  %s176_s0 = inlined_call_operand.vmem [shape: f32[16,32], index: 0, kind: input, shape index: {}]   ;;  %s177_s2 = inlined_call_operand.vmem [shape: f32[1,32], index: 2, kind: input, shape index: {}]   ;;  %s178_s3 = inlined_call_operand.vmem [shape: f32[16,32], index: 3, kind: input, shape index: {}]   ;;  %s179_s4 = inlined_call_operand.vmem [shape: f32[16,32], index: 4, kind: output, shape index: {}]  }
   0x1   :  { %106 = vmatprep.subr.bf16.mxu0 %v118_v0  ;;  %v116_v1 = vld [vmem:[%s175_s1] sm:$0xff]   ;;  %110 = vmatprep.mubr.msk.bf16.mxu0 %vm119_vm0, %v118_v0  ;;  %v117_v2 = vld [vmem:[%s175_s1 + $0x8] sm:$0xff]  }
   0x2   :  { %107 = vmatpush3.bf16.msra.mxu0 %v116_v1  ;;  %v18_v3 = vld [vmem:[%s176_s0] sm:$0xff]  ;;  %v19_v4 = vld [vmem:[%s176_s0 + $0x8] sm:$0xff] }
   0x3   :  { %108 = vmatprep.subr.bf16.mxu0 %v118_v0  ;;  %v20_v5 = vpack.c.bf16 %v19_v4, %v18_v3  ;;  %v99_v6 = vld [vmem:[%s177_s2] ss:$0 sm:$0xff]  ;;  %v90_v12 = vld [vmem:[%s178_s3 + $0x8] sm:$0xff] }
   0x4   :  { %v89_v8 = vld [vmem:[%s178_s3] sm:$0xff] }
   0x6   :  { %109 = vmatpush3.bf16.msra.mxu0 %v117_v2 }
   0x9   :  { %111 = vmatmul.mubr.msk.bf16.vlgmr.msra.gmra.mrb[0].mxu0 %vm44_vm1, %v20_v5 }
  0xdc   :  { %v82_v7 = vpop.f32.mrb[0].mxu0 }
  0xdd   :  { %v83_v9 = vadd.f32 %v99_v6, %v82_v7  ;;  %v112_v10 = vpop.f32.mrb[1].mxu0 }
  0xde   :  { %v85_v11 = vpop.f32.mrb[2].mxu0 }
  0xdf   :  { %v91_v13 = vadd.f32 %v89_v8, %v83_v9  ;;  %v86_v14 = vadd.f32 %v99_v6, %v85_v11  ;;  %v113_v15 = vpop.f32.mrb[3].mxu0 }
  0xe1   :  { %93 = vst.msk [vmem:[%s179_s4] sm:$0xff] %vm44_vm1, %v91_v13  ;;  %v92_v16 = vadd.f32 %v90_v12, %v86_v14 }
  0xe3   :  { %94 = vst.msk [vmem:[%s179_s4 + $0x8] sm:$0xff] %vm44_vm1, %v92_v16 }

// kernel: transformer_forward.22
= control target key start
LH: loop header
LB: loop body
LE: loop exit
PB: predicated region body
PF: predicated region fallthrough
CT: control target
= control target key end

     0   :  { %vm29_vm0 = vcmask 261120   ;;  %v328_v15 = vmov 0.0   ;;  %vm329_vm1 = vmmov 0   ;;  %vm209_vm2 = vcmask 785408   ;;  %s435_s0 = inlined_call_operand.vmem [shape: f32[16,32], index: 0, kind: input, shape index: {}]   ;;  %s436_s3 = inlined_call_operand.vmem [shape: bf16[32,96], index: 3, kind: input, shape index: {}]   ;;  %s437_s1 = inlined_call_operand.vmem [shape: f32[1,32], index: 1, kind: input, shape index: {}]   ;;  %s438_s2 = inlined_call_operand.vmem [shape: f32[1,32], index: 2, kind: input, shape index: {}]   ;;  %s439_s5 = inlined_call_operand.vmem [shape: bf16[96,32], index: 5, kind: input, shape index: {}]   ;;  %s440_s4 = inlined_call_operand.vmem [shape: f32[1,96], index: 4, kind: input, shape index: {}]   ;;  %s441_s6 = inlined_call_operand.vmem [shape: f32[1,32], index: 6, kind: input, shape index: {}]   ;;  %s442_s7 = inlined_call_operand.vmem [shape: f32[16,32], index: 7, kind: output, shape index: {}]  }
   0x1   :  { %v373_v0 = vld [vmem:[%s435_s0] sm:$0xff]  ;;  %v378_v1 = vld [vmem:[%s435_s0 + $0x8] sm:$0xff]  ;;  %286 = vmatprep.subr.bf16.mxu0 %v328_v15  ;;  %294 = vmatprep.subr.bf16.mxu1 %v328_v15  ;;  %v316_v36 = vld [vmem:[%s439_s5 + $0x10] sm:$0xff]  }
   0x2   :  { %v30_v2 = vsel %vm29_vm0, %v373_v0, 0.0  ;;  %v33_v3 = vsel %vm29_vm0, %v378_v1, 0.0  ;;  %v312_v14 = vld [vmem:[%s436_s3] sm:$0xff]   ;;  %v313_v16 = vld [vmem:[%s436_s3 + $0x8] sm:$0xff]   ;;  %290 = vmatprep.mubr.msk.bf16.mxu0 %vm329_vm1, %v328_v15  ;;  %306 = vmatprep.mubr.msk.bf16.mxu1 %vm329_vm1, %v328_v15  ;;  %v317_v37 = vld [vmem:[%s439_s5 + $0x18] sm:$0xff]  }
   0x3   :  { %31 = vadd.xlane.f32.xlu0 %v30_v2  ;;  %287 = vmatpush3.bf16.msra.mxu0 %v312_v14  ;;  %v262_v25 = vld [vmem:[%s437_s1] ss:$0 sm:$0xff]  ;;  %v315_v35 = vld [vmem:[%s439_s5 + $0x8] sm:$0xff]  }
   0x4   :  { %288 = vmatprep.subr.bf16.mxu0 %v328_v15  ;;  %v263_v29 = vld [vmem:[%s438_s2] ss:$0 sm:$0xff]  ;;  %v319_v39 = vld [vmem:[%s439_s5 + $0x28] sm:$0xff]  }
   0x5   :  { %v314_v34 = vld [vmem:[%s439_s5] sm:$0xff]  }
   0x6   :  { %295 = vmatpush3.bf16.msra.mxu1 %v314_v34  ;;  %v318_v38 = vld [vmem:[%s439_s5 + $0x20] sm:$0xff]  }
   0x7   :  { %34 = vadd.xlane.f32.xlu0 %v33_v3  ;;  %289 = vmatpush3.bf16.msra.mxu0 %v313_v16  ;;  %v264_v40 = vld [vmem:[%s440_s4] ss:$0 sm:$0xff] }
   0x8   :  { %296 = vmatprep.subr.bf16.mxu1 %v328_v15  ;;  %v268_v58 = vld [vmem:[%s441_s6] ss:$0 sm:$0xff] }
   0xa   :  { %297 = vmatpush3.bf16.msra.mxu1 %v315_v35 }
   0xb   :  { %298 = vmatprep.subr.bf16.mxu1 %v328_v15 }
   0xe   :  { %299 = vmatpush3.bf16.msra.mxu1 %v316_v36 }
   0xf   :  { %300 = vmatprep.subr.bf16.mxu1 %v328_v15 }
  0x12   :  { %301 = vmatpush3.bf16.msra.mxu1 %v317_v37 }
  0x13   :  { %302 = vmatprep.subr.bf16.mxu1 %v328_v15 }
  0x16   :  { %303 = vmatpush3.bf16.msra.mxu1 %v318_v38 }
  0x17   :  { %304 = vmatprep.subr.bf16.mxu1 %v328_v15 }
  0x1a   :  { %305 = vmatpush3.bf16.msra.mxu1 %v319_v39 }
  0x90   :  { %v32_v4 = vpop.xlane.xlu0 %31 }
  0x91   :  { %v37_v5 = vmul.f32 0.03125, %v32_v4 }
  0x93   :  { %v39_v6 = vsub.f32 %v373_v0, %v37_v5 }
  0x94   :  { %v35_v7 = vpop.xlane.xlu0 %34 }
  0x95   :  { %v38_v8 = vmul.f32 0.03125, %v35_v7  ;;  %v41_v9 = vmul.f32 %v39_v6, %v39_v6 }
  0x97   :  { %v40_v10 = vsub.f32 %v378_v1, %v38_v8  ;;  %v43_v11 = vsel %vm29_vm0, %v41_v9, 0.0 }
  0x98   :  { %44 = vadd.xlane.f32.xlu1 %v43_v11 }
  0x99   :  { %v42_v12 = vmul.f32 %v40_v10, %v40_v10 }
  0x9b   :  { %v46_v13 = vsel %vm29_vm0, %v42_v12, 0.0 }
  0x9c   :  { %47 = vadd.xlane.f32.xlu1 %v46_v13 }
 0x125   :  { %v45_v17 = vpop.xlane.xlu1 %44 }
 0x126   :  { %v49_v18 = vmul.f32 0.03125, %v45_v17 }
 0x128   :  { %v51_v19 = vadd.f32 1e-05, %v49_v18 }
 0x129   :  { %v48_v20 = vpop.xlane.xlu1 %47 }
 0x12a   :  { %320 = vrsqrt.f32 %v51_v19  ;;  %v50_v21 = vmul.f32 0.03125, %v48_v20 }
 0x12c   :  { %v52_v22 = vadd.f32 1e-05, %v50_v21 }
 0x12e   :  { %322 = vrsqrt.f32 %v52_v22 }
 0x134   :  { %v321_v23 = vpop.eup %320 }
 0x135   :  { %v55_v24 = vmul.f32 %v321_v23, %v39_v6 }
 0x137   :  { %v64_v28 = vmul.f32 %v262_v25, %v55_v24 }
 0x138   :  { %v323_v26 = vpop.eup %322 }
 0x139   :  { %v56_v27 = vmul.f32 %v323_v26, %v40_v10  ;;  %v73_v31 = vadd.f32 %v263_v29, %v64_v28 }
 0x13b   :  { %v65_v30 = vmul.f32 %v262_v25, %v56_v27 }
 0x13d   :  { %v74_v32 = vadd.f32 %v263_v29, %v65_v30 }
 0x13f   :  { %v75_v33 = vpack.c.bf16 %v74_v32, %v73_v31 }
 0x141   :  { %291 = vmatmul.mubr.msk.bf16.vlgmr.msra.gmra.mrb[0].mxu0 %vm29_vm0, %v75_v33 }
 0x214   :  { %v136_v41 = vpop.f32.mrb[0].mxu0 }
 0x215   :  { %v137_v42 = vadd.f32 %v264_v40, %v136_v41  ;;  %v292_v43 = vpop.f32.mrb[1].mxu0 }
 0x216   :  { %v139_v44 = vpop.f32.mrb[2].mxu0 }
 0x217   :  { %v145_v45 = vmul.f32 0.70710677, %v137_v42  ;;  %v140_v46 = vadd.f32 %v264_v40, %v139_v44  ;;  %v293_v47 = vpop.f32.mrb[3].mxu0  ;;  %v143_v52 = vmul.f32 0.5, %v137_v42 }
 0x219   :  { %324 = verf.f32 %v145_v45  ;;  %v146_v48 = vmul.f32 0.70710677, %v140_v46  ;;  %v144_v53 = vmul.f32 0.5, %v140_v46 }
 0x21b   :  { %326 = verf.f32 %v146_v48 }
 0x223   :  { %v325_v49 = vpop.eup %324 }
 0x224   :  { %v149_v50 = vadd.f32 1.0, %v325_v49 }
 0x225   :  { %v327_v51 = vpop.eup %326 }
 0x226   :  { %v150_v54 = vadd.f32 1.0, %v327_v51  ;;  %v151_v55 = vmul.f32 %v149_v50, %v143_v52 }
 0x228   :  { %v152_v56 = vmul.f32 %v150_v54, %v144_v53 }
 0x22a   :  { %v153_v57 = vpack.c.bf16 %v152_v56, %v151_v55 }
 0x22c   :  { %307 = vmatmul.mubr.msk.bf16.vlgmr.msra.gmra.mrb[0].mxu1 %vm209_vm2, %v153_v57 }
 0x2ff   :  { %v247_v59 = vpop.f32.mrb[0].mxu1 }
 0x300   :  { %v248_v60 = vadd.f32 %v268_v58, %v247_v59  ;;  %v308_v61 = vpop.f32.mrb[1].mxu1 }
 0x301   :  { %v250_v62 = vpop.f32.mrb[2].mxu1 }
 0x302   :  { %v254_v63 = vadd.f32 %v248_v60, %v373_v0  ;;  %v251_v2 = vadd.f32 %v268_v58, %v250_v62  ;;  %v309_v3 = vpop.f32.mrb[3].mxu1 }
 0x304   :  { %256 = vst.msk [vmem:[%s442_s7] sm:$0xff] %vm29_vm0, %v254_v63  ;;  %v255_v4 = vadd.f32 %v251_v2, %v378_v1 }
 0x306   :  { %257 = vst.msk [vmem:[%s442_s7 + $0x8] sm:$0xff] %vm29_vm0, %v255_v4 }

// kernel: transformer_forward.16
= control target key start
LH: loop header
LB: loop body
LE: loop exit
PB: predicated region body
PF: predicated region fallthrough
CT: control target
= control target key end

     0   :  { %vm23_vm0 = vcmask 261120   ;;  %v169_v15 = vmov 0.0   ;;  %vm170_vm1 = vmmov 0   ;;  %vm137_vm2 = vcmask 785408   ;;  %s233_s0 = inlined_call_operand.vmem [shape: f32[16,32], index: 0, kind: input, shape index: {}]   ;;  %s234_s3 = inlined_call_operand.vmem [shape: bf16[32,96], index: 3, kind: input, shape index: {}]   ;;  %s235_s1 = inlined_call_operand.vmem [shape: f32[1,32], index: 1, kind: input, shape index: {}]   ;;  %s236_s2 = inlined_call_operand.vmem [shape: f32[1,32], index: 2, kind: input, shape index: {}]   ;;  %s237_s4 = inlined_call_operand.vmem [shape: f32[1,96], index: 4, kind: input, shape index: {}]   ;;  %s238_s5 = inlined_call_operand.vmem [shape: f32[16,96], index: 5, kind: output, shape index: {}]  }
   0x1   :  { %v21_v0 = vld [vmem:[%s233_s0] sm:$0xff]  ;;  %v22_v1 = vld [vmem:[%s233_s0 + $0x8] sm:$0xff]  ;;  %153 = vmatprep.subr.bf16.mxu0 %v169_v15  ;;  %157 = vmatprep.mubr.msk.bf16.mxu0 %vm170_vm1, %v169_v15 }
   0x2   :  { %v24_v2 = vsel %vm23_vm0, %v21_v0, 0.0  ;;  %v27_v3 = vsel %vm23_vm0, %v22_v1, 0.0  ;;  %v163_v14 = vld [vmem:[%s234_s3] sm:$0xff]   ;;  %v164_v16 = vld [vmem:[%s234_s3 + $0x8] sm:$0xff]  }
   0x3   :  { %25 = vadd.xlane.f32.xlu0 %v24_v2  ;;  %154 = vmatpush3.bf16.msra.mxu0 %v163_v14  ;;  %v144_v25 = vld [vmem:[%s235_s1] ss:$0 sm:$0xff] }
   0x4   :  { %155 = vmatprep.subr.bf16.mxu0 %v169_v15  ;;  %v145_v29 = vld [vmem:[%s236_s2] ss:$0 sm:$0xff] }
   0x5   :  { %v146_v34 = vld [vmem:[%s237_s4] ss:$0 sm:$0xff] }
   0x7   :  { %28 = vadd.xlane.f32.xlu0 %v27_v3  ;;  %156 = vmatpush3.bf16.msra.mxu0 %v164_v16 }
  0x90   :  { %v26_v4 = vpop.xlane.xlu0 %25 }
  0x91   :  { %v31_v5 = vmul.f32 0.03125, %v26_v4 }
  0x93   :  { %v33_v6 = vsub.f32 %v21_v0, %v31_v5 }
  0x94   :  { %v29_v7 = vpop.xlane.xlu0 %28 }
  0x95   :  { %v32_v8 = vmul.f32 0.03125, %v29_v7  ;;  %v35_v9 = vmul.f32 %v33_v6, %v33_v6 }
  0x97   :  { %v34_v10 = vsub.f32 %v22_v1, %v32_v8  ;;  %v37_v11 = vsel %vm23_vm0, %v35_v9, 0.0 }
  0x98   :  { %38 = vadd.xlane.f32.xlu1 %v37_v11 }
  0x99   :  { %v36_v12 = vmul.f32 %v34_v10, %v34_v10 }
  0x9b   :  { %v40_v13 = vsel %vm23_vm0, %v36_v12, 0.0 }
  0x9c   :  { %41 = vadd.xlane.f32.xlu1 %v40_v13 }
 0x125   :  { %v39_v17 = vpop.xlane.xlu1 %38 }
 0x126   :  { %v43_v18 = vmul.f32 0.03125, %v39_v17 }
 0x128   :  { %v45_v19 = vadd.f32 1e-05, %v43_v18 }
 0x129   :  { %v42_v20 = vpop.xlane.xlu1 %41 }
 0x12a   :  { %165 = vrsqrt.f32 %v45_v19  ;;  %v44_v21 = vmul.f32 0.03125, %v42_v20 }
 0x12c   :  { %v46_v22 = vadd.f32 1e-05, %v44_v21 }
 0x12e   :  { %167 = vrsqrt.f32 %v46_v22 }
 0x134   :  { %v166_v23 = vpop.eup %165 }
 0x135   :  { %v49_v24 = vmul.f32 %v166_v23, %v33_v6 }
 0x137   :  { %v58_v28 = vmul.f32 %v144_v25, %v49_v24 }
 0x138   :  { %v168_v26 = vpop.eup %167 }
 0x139   :  { %v50_v27 = vmul.f32 %v168_v26, %v34_v10  ;;  %v67_v31 = vadd.f32 %v145_v29, %v58_v28 }
 0x13b   :  { %v59_v30 = vmul.f32 %v144_v25, %v50_v27 }
 0x13d   :  { %v68_v32 = vadd.f32 %v145_v29, %v59_v30 }
 0x13f   :  { %v69_v33 = vpack.c.bf16 %v68_v32, %v67_v31 }
 0x141   :  { %158 = vmatmul.mubr.msk.bf16.vlgmr.msra.gmra.mrb[0].mxu0 %vm23_vm0, %v69_v33 }
 0x214   :  { %v130_v35 = vpop.f32.mrb[0].mxu0 }
 0x215   :  { %v131_v36 = vadd.f32 %v146_v34, %v130_v35  ;;  %v159_v37 = vpop.f32.mrb[1].mxu0 }
 0x216   :  { %v133_v38 = vpop.f32.mrb[2].mxu0 }
 0x217   :  { %138 = vst.msk [vmem:[%s238_s5] sm:$0xff] %vm137_vm2, %v131_v36  ;;  %v134_v39 = vadd.f32 %v146_v34, %v133_v38  ;;  %v160_v40 = vpop.f32.mrb[3].mxu0 }
 0x219   :  { %139 = vst.msk [vmem:[%s238_s5 + $0x8] sm:$0xff] %vm137_vm2, %v134_v39 }

// kernel: transformer_forward.17
= control target key start
LH: loop header
LB: loop body
LE: loop exit
PB: predicated region body
PF: predicated region fallthrough
CT: control target
= control target key end

     0   :  { %s787_s6 = smov 0   ;;  %s877_s0 = inlined_call_operand.vmem [shape: f32[2,8,96], index: 0, kind: input, shape index: {}]   ;;  %s878_s1 = inlined_call_operand.vmem [shape: f32[2,8,32], index: 1, kind: output, shape index: {}]  }
   0x1 LB: > { %s632_s7 = sadd.s32 4294967295, %s759_s6   ;;  %p636_p0 = scmp.ge.s32.totalorder %s759_s6, 1  ;;  %s759_s6 = sphi %s787_s6, %s11_s6  }
   0x2   : > { %p86_p1 = scmp.lt.s32.totalorder %s759_s6, 3 }
   0x4   : > { %p87_p2 = pnand %p636_p0, %p86_p1 }
   0x5   : > { %p104_p3 = scmp.lt.s32.totalorder (!%p87_p2), %s632_s7, 1  ;;  %v761_v0 = vmov (!%p87_p2), 0.0   ;;  %vm762_vm0 = vmmov (!%p87_p2), 0   ;;  %s763_s12 = smov (!%p87_p2), 96   ;;  %vm118_vm1 = vcmask (!%p87_p2), 64512   ;;  %vm183_vm2 = vcmask (!%p87_p2), 1043456  }
   0x6   : > { %90 = sbr.rel (%p87_p2) target bundleno = 1600 (0x640), region = 24  ;;  %665 = vmatprep.subr.bf16.mxu0 (!%p87_p2), %v761_v0  ;;  %667 = vmatprep.mubr.msk.bf16.mxu0 (!%p87_p2), %vm762_vm0, %v761_v0  ;;  %s764_s13 = smov (!%p87_p2), 64   ;;  %vm573_vm3 = vcmask (!%p87_p2), 130048   ;;  %vm575_vm4 = vcmask (!%p87_p2), 195584   ;;  %vm577_vm5 = vcmask (!%p87_p2), 261120  }
   0x7   : > { %671 = vmatprep.subr.bf16.mxu1 (!%p87_p2), %v761_v0  ;;  %673 = vmatprep.mubr.msk.bf16.mxu1 (!%p87_p2), %vm762_vm0, %v761_v0  ;;  %s765_s14 = smov (!%p87_p2), 88   ;;  %s766_s15 = smov (!%p87_p2), 72  }
   0x8   : > { %s767_s16 = smov (!%p87_p2), 120   ;;  %s768_s17 = smov (!%p87_p2), 80  }
   0x9   : > { %s769_s18 = smov (!%p87_p2), 112   ;;  %s770_s19 = smov (!%p87_p2), 104  }
   0xa   : > { %s771_s20 = smov (!%p87_p2), 56   ;;  %s772_s21 = smov (!%p87_p2), 48  }
   0xb   : > { %s773_s22 = smov (!%p87_p2), 40   ;;  %s774_s23 = smov (!%p87_p2), 8  }
   0xc   : > { %s775_s24 = smov (!%p87_p2), 16   ;;  %s776_s25 = smov (!%p87_p2), 24  }
   0xd   : > { %s880_s7 = smov (!%p104_p3, %s632_s7), 1 }
   0xe   : > { %s637_s8 = sshll.u32 %s880_s7, 3 }
   0xf   : > { %s107_s11 = scalar_lea.vmem %s877_s0, %s637_s8  ;;  %s111_s28 = scalar_lea.vmem %s878_s1, %s637_s8 }
  0x10   : > { %v113_v1 = vld [vmem:[%s107_s11] sm:$0xff] }
  0x11   : > { %v809_v2 = vpack.c.bf16 %v113_v1, %v113_v1 }
  0x13   : > { %116 = vrot.lane.b32.xlu0 %v809_v2, %s763_s12  ;;  %178 = vrot.lane.b32.xlu1 %v809_v2, %s764_s13 }
  0x17   : > { %229 = vrot.lane.b32.xlu1 %v809_v2, %s765_s14 }
  0x85   : > { %v117_v3 = vpop.permute.xlu0 %116  ;;  %v179_v11 = vpop.permute.xlu1 %178 }
  0x86   : > { %v123_v4 = vsel %vm118_vm1, %v117_v3, 0  ;;  %v185_v12 = vsel %vm183_vm2, %v179_v11, 0 }
  0x87   : > { %666 = vmatpush3.bf16.xpose.msra.mxu0 %v123_v4  ;;  %672 = vmatpush3.bf16.msra.mxu1 %v185_v12 }
  0x88   : > { %683 = vmatprep.subr.bf16.mxu0 %v761_v0  ;;  %677 = vmatprep.subr.bf16.mxu1 %v761_v0 }
  0x89   : > { %v230_v18 = vpop.permute.xlu1 %229 }
  0x8a   : > { %v235_v24 = vsel %vm118_vm1, %v230_v18, 0 }
  0x8e   : > { %668 = vmatmul.mubr.msk.bf16.vlgmr.msra.gmra.mrb[0].mxu0 %vm118_vm1, %v809_v2 }
  0x8f   : > { %685 = vmatprep.mubr.msk.bf16.mxu0 %vm762_vm0, %v761_v0 }
 0x161   : > { %v159_v5 = vpop.f32.mrb[0].mxu0 }
 0x162   : > { %v165_v6 = vmul.f32 0.35355338, %v159_v5  ;;  %v669_v7 = vpop.f32.mrb[1].mxu0 }
 0x163   : > { %v162_v8 = vpop.f32.mrb[2].mxu0 }
 0x164   : > { %v670_v9 = vpop.f32.mrb[3].mxu0  ;;  %v166_v10 = vsel %vm118_vm1, %v165_v6, -inf }
 0x165   : > { %167 = vmax.xlane.f32.xlu0 %v166_v10 }
 0x17b   : > { %451 = vrot.lane.b32.xlu0 %v809_v2, %s766_s15 }
 0x1f2   : > { %v168_v13 = vpop.xlane.xlu0 %167 }
 0x1f3   : > { %v169_v14 = vsub.f32 %v165_v6, %v168_v13 }
 0x1f5   : > { %v170_v15 = vmul.f32 1.442695, %v169_v14 }
 0x1f6   : > { %v452_v27 = vpop.permute.xlu0 %451 }
 0x1f7   : > { %737 = vpow2.f32 %v170_v15  ;;  %v457_v29 = vsel %vm118_vm1, %v452_v27, 0 }
 0x201   : > { %v738_v16 = vpop.eup %737 }
 0x202   : > { %v172_v17 = vsel %vm118_vm1, %v738_v16, 0.0 }
 0x203   : > { %173 = vadd.xlane.f32.xlu1 %v172_v17 }
 0x214   : > { %227 = vrot.lane.b32.xlu1 %v809_v2, %s767_s16 }
 0x218   : > { %340 = vrot.lane.b32.xlu1 %v809_v2, %s768_s17 }
 0x21c   : > { %338 = vrot.lane.b32.xlu1 %v809_v2, %s769_s18 }
 0x220   : > { %449 = vrot.lane.b32.xlu1 %v809_v2, %s770_s19 }
 0x290   : > { %v174_v19 = vpop.xlane.xlu1 %173 }
 0x291   : > { %739 = vrcp.f32 %v174_v19 }
 0x294   : > { %v228_v22 = vpop.permute.xlu1 %227 }
 0x298   : > { %v341_v25 = vpop.permute.xlu1 %340 }
 0x299   : > { %v346_v26 = vsel %vm118_vm1, %v341_v25, 0 }
 0x29b   : > { %v740_v20 = vpop.eup %739 }
 0x29c   : > { %v176_v21 = vmul.f32 %v740_v20, %v738_v16  ;;  %v339_v28 = vpop.permute.xlu1 %338 }
 0x29e   : > { %v177_v23 = vpack.c.bf16 %v176_v21, %v176_v21 }
 0x2a0   : > { %674 = vmatmul.mubr.msk.bf16.vlgmr.msra.gmra.mrb[0].mxu1 %vm118_vm1, %v177_v23  ;;  %v450_v30 = vpop.permute.xlu1 %449 }
 0x2a1   : > { %678 = vmatpush3.bf16.xpose.msra.mxu1 %v235_v24  ;;  %679 = vmatprep.mubr.msk.bf16.mxu1 %vm762_vm0, %v761_v0 }
 0x2a2   : > { %689 = vmatprep.subr.bf16.mxu1 %v761_v0 }
 0x2a8   : > { %680 = vmatmul.mubr.msk.bf16.vlgmr.msra.gmra.mrb[4].mxu1 %vm118_vm1, %v228_v22 }
 0x2a9   : > { %690 = vmatpush3.bf16.xpose.msra.mxu1 %v346_v26  ;;  %691 = vmatprep.mubr.msk.bf16.mxu1 %vm762_vm0, %v761_v0 }
 0x2aa   : > { %701 = vmatprep.subr.bf16.mxu1 %v761_v0 }
 0x2b0   : > { %692 = vmatmul.mubr.msk.bf16.vlgmr.msra.gmra.mrb[8].mxu1 %vm118_vm1, %v339_v28 }
 0x2b1   : > { %702 = vmatpush3.bf16.xpose.msra.mxu1 %v457_v29  ;;  %703 = vmatprep.mubr.msk.bf16.mxu1 %vm762_vm0, %v761_v0 }
 0x2b8   : > { %704 = vmatmul.mubr.msk.bf16.vlgmr.msra.gmra.mrb[12].mxu1 %vm118_vm1, %v450_v30 }
 0x373   : > { %v844_v31 = vpop.f32.mrb[0].mxu1 }
 0x374   : > { %v675_v32 = vpop.f32.mrb[1].mxu1 }
 0x375   : > { %v224_v33 = vpop.f32.mrb[2].mxu1 }
 0x376   : > { %v676_v34 = vpop.f32.mrb[3].mxu1 }
 0x37b   : > { %v271_v35 = vpop.f32.mrb[4].mxu1 }
 0x37c   : > { %v277_v36 = vmul.f32 0.35355338, %v271_v35  ;;  %v681_v37 = vpop.f32.mrb[5].mxu1 }
 0x37d   : > { %v274_v38 = vpop.f32.mrb[6].mxu1 }
 0x37e   : > { %v682_v39 = vpop.f32.mrb[7].mxu1  ;;  %v278_v40 = vsel %vm118_vm1, %v277_v36, -inf }
 0x37f   : > { %279 = vmax.xlane.f32.xlu1 %v278_v40 }
 0x383   : > { %v382_v41 = vpop.f32.mrb[8].mxu1 }
 0x384   : > { %v388_v42 = vmul.f32 0.35355338, %v382_v41  ;;  %v693_v43 = vpop.f32.mrb[9].mxu1 }
 0x385   : > { %v385_v44 = vpop.f32.mrb[10].mxu1 }
 0x386   : > { %v389_v45 = vsel %vm118_vm1, %v388_v42, -inf  ;;  %v694_v46 = vpop.f32.mrb[11].mxu1 }
 0x387   : > { %390 = vmax.xlane.f32.xlu0 %v389_v45 }
 0x38b   : > { %v493_v47 = vpop.f32.mrb[12].mxu1 }
 0x38c   : > { %v499_v48 = vmul.f32 0.35355338, %v493_v47  ;;  %v705_v49 = vpop.f32.mrb[13].mxu1 }
 0x38d   : > { %v496_v50 = vpop.f32.mrb[14].mxu1 }
 0x38e   : > { %v500_v51 = vsel %vm118_vm1, %v499_v48, -inf  ;;  %v706_v52 = vpop.f32.mrb[15].mxu1 }
 0x38f   : > { %501 = vmax.xlane.f32.xlu1 %v500_v51 }
 0x40c   : > { %v280_v53 = vpop.xlane.xlu1 %279 }
 0x40d   : > { %v281_v54 = vsub.f32 %v277_v36, %v280_v53 }
 0x40f   : > { %v282_v55 = vmul.f32 1.442695, %v281_v54 }
 0x411   : > { %741 = vpow2.f32 %v282_v55 }
 0x414   : > { %v391_v63 = vpop.xlane.xlu0 %390 }
 0x415   : > { %v392_v1 = vsub.f32 %v388_v42, %v391_v63 }
 0x417   : > { %v393_v3 = vmul.f32 1.442695, %v392_v1 }
 0x41b   : > { %v742_v56 = vpop.eup %741 }
 0x41c   : > { %v502_v57 = vpop.xlane.xlu1 %501  ;;  %v284_v58 = vsel %vm118_vm1, %v742_v56, 0.0 }
 0x41d   : > { %v503_v59 = vsub.f32 %v499_v48, %v502_v57  ;;  %285 = vadd.xlane.f32.xlu1 %v284_v58 }
 0x41f   : > { %v504_v60 = vmul.f32 1.442695, %v503_v59 }
 0x421   : > { %743 = vpow2.f32 %v504_v60 }
 0x422   : > { %745 = vpow2.f32 %v393_v3 }
 0x42b   : > { %v744_v61 = vpop.eup %743 }
 0x42c   : > { %v506_v62 = vsel %vm118_vm1, %v744_v61, 0.0  ;;  %v746_v4 = vpop.eup %745 }
 0x42d   : > { %507 = vadd.xlane.f32.xlu0 %v506_v62  ;;  %v395_v5 = vsel %vm118_vm1, %v746_v4, 0.0 }
 0x42e   : > { %290 = vrot.lane.b32.xlu1 %v809_v2, %s771_s20 }
 0x443   : > { %401 = vrot.lane.b32.xlu0 %v809_v2, %s772_s21 }
 0x452   : > { %396 = vadd.xlane.f32.xlu1 %v395_v5 }
 0x463   : > { %512 = vrot.lane.b32.xlu1 %v809_v2, %s773_s22 }
 0x4aa   : > { %v286_v6 = vpop.xlane.xlu1 %285 }
 0x4ab   : > { %747 = vrcp.f32 %v286_v6 }
 0x4ae   : > { %v291_v7 = vpop.permute.xlu1 %290 }
 0x4af   : > { %v296_v8 = vsel %vm183_vm2, %v291_v7, 0 }
 0x4b0   : > { %684 = vmatpush3.bf16.msra.mxu0 %v296_v8 }
 0x4b1   : > { %695 = vmatprep.subr.bf16.mxu0 %v761_v0 }
 0x4b5   : > { %v748_v9 = vpop.eup %747 }
 0x4b6   : > { %v288_v10 = vmul.f32 %v748_v9, %v742_v56 }
 0x4b8   : > { %v289_v11 = vpack.c.bf16 %v288_v10, %v288_v10 }
 0x4ba   : > { %686 = vmatmul.mubr.msk.bf16.vlgmr.msra.gmra.mrb[4].mxu0 %vm118_vm1, %v289_v11  ;;  %v508_v12 = vpop.xlane.xlu0 %507 }
 0x4bb   : > { %697 = vmatprep.mubr.msk.bf16.mxu0 %vm762_vm0, %v761_v0 }
 0x4be   : > { %v402_v13 = vpop.permute.xlu0 %401 }
 0x4bf   : > { %v407_v2 = vsel %vm183_vm2, %v402_v13, 0 }
 0x4c0   : > { %696 = vmatpush3.bf16.msra.mxu0 %v407_v2 }
 0x4c1   : > { %707 = vmatprep.subr.bf16.mxu0 %v761_v0 }
 0x4df   : > { %v397_v14 = vpop.xlane.xlu1 %396 }
 0x4e0   : > { %749 = vrcp.f32 %v397_v14 }
 0x4e1   : > { %751 = vrcp.f32 %v508_v12 }
 0x4e3   : > { %v513_v16 = vpop.permute.xlu1 %512 }
 0x4e4   : > { %v518_v18 = vsel %vm183_vm2, %v513_v16, 0 }
 0x4ea   : > { %v750_v15 = vpop.eup %749 }
 0x4eb   : > { %v399_v17 = vmul.f32 %v750_v15, %v746_v4  ;;  %v752_v20 = vpop.eup %751 }
 0x4ec   : > { %v510_v21 = vmul.f32 %v752_v20, %v744_v61 }
 0x4ed   : > { %v400_v19 = vpack.c.bf16 %v399_v17, %v399_v17 }
 0x4ee   : > { %v511_v22 = vpack.c.bf16 %v510_v21, %v510_v21 }
 0x4ef   : > { %698 = vmatmul.mubr.msk.bf16.vlgmr.msra.gmra.mrb[8].mxu0 %vm118_vm1, %v400_v19 }
 0x4f0   : > { %708 = vmatpush3.bf16.msra.mxu0 %v518_v18  ;;  %709 = vmatprep.mubr.msk.bf16.mxu0 %vm762_vm0, %v761_v0 }
 0x4f7   : > { %710 = vmatmul.mubr.msk.bf16.vlgmr.msra.gmra.mrb[12].mxu0 %vm118_vm1, %v511_v22 }
 0x58d   : > { %v332_v23 = vpop.f32.mrb[4].mxu0 }
 0x58e   : > { %561 = vrot.lane.b32.xlu1 %v332_v23, %s774_s23  ;;  %v687_v24 = vpop.f32.mrb[5].mxu0 }
 0x58f   : > { %v335_v25 = vpop.f32.mrb[6].mxu0 }
 0x590   : > { %v688_v26 = vpop.f32.mrb[7].mxu0 }
 0x5c2   : > { %v443_v27 = vpop.f32.mrb[8].mxu0 }
 0x5c3   : > { %565 = vrot.lane.b32.xlu0 %v443_v27, %s775_s24  ;;  %v699_v28 = vpop.f32.mrb[9].mxu0 }
 0x5c4   : > { %v446_v29 = vpop.f32.mrb[10].mxu0 }
 0x5c5   : > { %v700_v30 = vpop.f32.mrb[11].mxu0 }
 0x5ca   : > { %v554_v32 = vpop.f32.mrb[12].mxu0 }
 0x5cb   : > { %569 = vrot.lane.b32.xlu1 %v554_v32, %s776_s25  ;;  %v711_v0 = vpop.f32.mrb[13].mxu0 }
 0x5cc   : > { %v557_v33 = vpop.f32.mrb[14].mxu0 }
 0x5cd   : > { %v712_v34 = vpop.f32.mrb[15].mxu0 }
 0x600   : > { %v562_v35 = vpop.permute.xlu1 %561 }
 0x601   : > { %v572_v37 = vsel %vm118_vm1, %v844_v31, %v562_v35 }
 0x635   : > { %v566_v36 = vpop.permute.xlu0 %565 }
 0x636   : > { %v574_v38 = vsel %vm573_vm3, %v572_v37, %v566_v36 }
 0x63d   : > { %v570_v39 = vpop.permute.xlu1 %569 }
 0x63e   : > { %v576_v40 = vsel %vm575_vm4, %v574_v38, %v570_v39 }
 0x63f   : > { %578 = vst.msk [vmem:[%s111_s28] sm:$0xff] %vm577_vm5, %v576_v40 }
 0x640 PF: > { %s11_s6 = sadd.s32 1, %s759_s6  }
 0x641   : > { %p8_p4 = scmp.ge.s32.totalorder %s11_s6, 4  }
 0x643   :  { %10 = sbr.rel (!%p8_p4) target bundleno = 1 (0x1), region = 54 }

// kernel: transformer_forward.31
= control target key start
LH: loop header
LB: loop body
LE: loop exit
PB: predicated region body
PF: predicated region fallthrough
CT: control target
= control target key end

     0   :  { %v194_v1 = vmov 0.0   ;;  %vm47_vm0 = vcmask 261120   ;;  %vm195_vm1 = vmmov 0   ;;  %v196_v5 = vmov 0   ;;  %s261_s0 = inlined_call_operand.vmem [shape: f32[16,32], index: 0, kind: input, shape index: {}]   ;;  %s262_s1 = inlined_call_operand.vmem [shape: bf16[64,32], index: 1, kind: input, shape index: {}]   ;;  %s263_s2 = inlined_call_operand.vmem [shape: f32[16,1], index: 2, kind: input, shape index: {}]   ;;  %s264_s3 = inlined_call_operand.hbm [shape: f32[16,64], index: 3, kind: output, shape index: {}]  }
   0x1   :  { %v166_v0 = vld [vmem:[%s262_s1] sm:$0xff]   ;;  %147 = vmatprep.subr.bf16.mxu0 %v194_v1  ;;  %v167_v3 = vld [vmem:[%s262_s1 + $0x8] sm:$0xff]   ;;  %155 = vmatprep.mubr.msk.bf16.mxu0 %vm195_vm1, %v194_v1 }
   0x2   :  { %v52_v2 = vsel %vm47_vm0, %v166_v0, 0  ;;  %v104_v4 = vld [vmem:[%s263_s2] sm:$0xff]  ;;  %165 = vset.pattern.permute.xlu0 %v196_v5 }
   0x3   :  { %148 = vmatpush3.bf16.xpose.msra.mxu0 %v52_v2 }
   0x4   :  { %149 = vmatprep.subr.bf16.mxu0 %v194_v1 }
   0x5   :  { %8 = vsyncpa [#allocation3], 0  ;;  %108 = vperm.xlu0 %165, %v104_v4   ;;  %v105_v6 = vld [vmem:[%s263_s2 + $0x8] sm:$0xff]  ;;  %v55_v7 = vsel %vm47_vm0, %v167_v3, 0  ;;  %v168_v8 = vld [vmem:[%s262_s1 + $0x10] sm:$0xff]   ;;  %s197_s27 = smov [#allocation2]  }
   0x6   :  { %v58_v9 = vsel %vm47_vm0, %v168_v8, 0  ;;  %v169_v10 = vld [vmem:[%s262_s1 + $0x18] sm:$0xff]   ;;  %v16_v12 = vld [vmem:[%s261_s0] sm:$0xff]  ;;  %v17_v13 = vld [vmem:[%s261_s0 + $0x8] sm:$0xff]  ;;  %s126_s28 = sshll.u32 %s197_s27, 4  ;;  %vm118_vm2 = vcmask 523264   ;;  %s127_s28 = int_to_ptr.vmem [resolvable:$true] %s126_s28 }
   0x7   :  { %v61_v11 = vsel %vm47_vm0, %v169_v10, 0  ;;  %v18_v14 = vpack.c.bf16 %v17_v13, %v16_v12  ;;  %s170_s1 = scalar_lea.vmem %s127_s28, 256  ;;  %p175_p1 = scmp.lt.s32.totalorder %s127_s28, %s127_s28 }
   0x8   :  { %p171_p0 = scmp.ne.s32.totalorder %s127_s28, %s170_s1  ;;  %p176_p2 = scmp.lt.s32.totalorder %s170_s1, %s170_s1 }
   0x9   :  { %113 = vperm.xlu0 %165, %v105_v6  }
   0xa   :  { %p177_p3 = por %p176_p2, %p175_p1 }
   0xb   :  { %150 = vmatpush3.bf16.xpose.msra.mxu0 %v55_v7 }
   0xc   :  { %151 = vmatprep.subr.bf16.mxu0 %v194_v1  ;;  %p178_p4 = pnand %p177_p3, %p171_p0 }
  0x13   :  { %152 = vmatpush3.bf16.xpose.msra.mxu0 %v58_v9 }
  0x14   :  { %153 = vmatprep.subr.bf16.mxu0 %v194_v1 }
  0x1b   :  { %154 = vmatpush3.bf16.xpose.msra.mxu0 %v61_v11 }
  0x22   :  { %156 = vmatmul.mubr.msk.bf16.vlgmr.msra.gmra.mrb[0].mxu0 %vm47_vm0, %v18_v14 }
  0x84   :  { %v109_v15 = vpop.permute.xlu0 %108 }
  0x88   :  { %v114_v19 = vpop.permute.xlu0 %113 }
  0xf5   :  { %v97_v16 = vpop.f32.mrb[0].mxu0 }
  0xf6   :  { %v116_v17 = vsub.f32 %v97_v16, %v109_v15  ;;  %v157_v18 = vpop.f32.mrb[1].mxu0 }
  0xf7   :  { %v100_v20 = vpop.f32.mrb[2].mxu0 }
  0xf8   :  { %119 = vst.msk [vmem:[#allocation2] sm:$0xff] %vm118_vm2, %v116_v17  ;;  %v117_v21 = vsub.f32 %v100_v20, %v114_v19  ;;  %v158_v22 = vpop.f32.mrb[3].mxu0 }
  0xfa   :  { %120 = vst.msk [vmem:[#allocation2 + $0x8] sm:$0xff] %vm118_vm2, %v117_v21 }
  0xfb   :  { %181 = shalt.err (!%p178_p4)
}
  0xfc   :  { %s182_s30 = scalar_lea.hbm %s264_s3, 256 }
  0xfd   :  { %p183_p5 = scmp.ne.s32.totalorder %s264_s3, %s182_s30  ;;  %p186_p6 = scmp.lt.u32.totalorder %s182_s30, %s264_s3 }
  0xff   :  { %p188_p7 = pnand %p186_p6, %p183_p5 }
 0x101   :  { %191 = shalt.err (!%p188_p7)
}
 0x102   :  { %s198_s8 = smov 128   ;;  %s199_s9 = smov 8  }
 0x103   :  { %132 = dma.vmem_to_hbm [thread:$0]  %s127_s28, 256, %s264_s3, [#allocation3], %s198_s8, %s198_s8, %s199_s9  }
 0x104   :  { %192 = dma.done.wait [#allocation3], 256  }
 0x105   :  { %193 = vsyncadd [#allocation3], 4294967040 }
 0x106   :  { %136 = vsyncpa [#allocation3], 1 }

// kernel: transformer_forward.30
= control target key start
LH: loop header
LB: loop body
LE: loop exit
PB: predicated region body
PF: predicated region fallthrough
CT: control target
= control target key end

     0   :  { %vm52_vm0 = vcmask 261120   ;;  %v222_v0 = vmov 0.0   ;;  %vm223_vm1 = vmmov 0   ;;  %vm16_vm2 = vcmask 7168   ;;  %s284_s1 = inlined_call_operand.vmem [shape: bf16[64,32], index: 1, kind: input, shape index: {}]   ;;  %s285_s0 = inlined_call_operand.vmem [shape: f32[16,32], index: 0, kind: input, shape index: {}]   ;;  %s286_s2 = inlined_call_operand.vmem [shape: f32[16,1], index: 2, kind: output, shape index: {}]  }
   0x1   :  { %188 = vmatprep.subr.bf16.mxu0 %v222_v0  ;;  %v206_v1 = vld [vmem:[%s284_s1] sm:$0xff]   ;;  %196 = vmatprep.mubr.msk.bf16.mxu0 %vm223_vm1, %v222_v0  ;;  %v207_v3 = vld [vmem:[%s284_s1 + $0x8] sm:$0xff]   ;;  %v208_v5 = vld [vmem:[%s284_s1 + $0x10] sm:$0xff]   ;;  %v224_v12 = vmov -inf   ;;  %19 = vst.msk [vmem:[#allocation3] sm:$0xff] %vm16_vm2, %v222_v0  ;;  %vm111_vm3 = vcmask 523264  }
   0x2   :  { %v57_v2 = vsel %vm52_vm0, %v206_v1, 0  ;;  %v60_v4 = vsel %vm52_vm0, %v207_v3, 0  ;;  %v63_v6 = vsel %vm52_vm0, %v208_v5, 0  ;;  %v209_v7 = vld [vmem:[%s284_s1 + $0x18] sm:$0xff]   ;;  %v21_v9 = vld [vmem:[%s285_s0] sm:$0xff]  ;;  %v22_v10 = vld [vmem:[%s285_s0 + $0x8] sm:$0xff] }
   0x3   :  { %189 = vmatpush3.bf16.xpose.msra.mxu0 %v57_v2  ;;  %v66_v8 = vsel %vm52_vm0, %v209_v7, 0  ;;  %v23_v11 = vpack.c.bf16 %v22_v10, %v21_v9  ;;  %17 = vst.msk [vmem:[#allocation2] sm:$0xff] %vm16_vm2, %v224_v12  ;;  %18 = vst.msk [vmem:[#allocation2 + $0x8] sm:$0xff] %vm16_vm2, %v224_v12  ;;  %v225_v19 = vmov 0  }
   0x4   :  { %190 = vmatprep.subr.bf16.mxu0 %v222_v0  ;;  %20 = vst.msk [vmem:[#allocation3 + $0x8] sm:$0xff] %vm16_vm2, %v222_v0  ;;  %204 = vset.pattern.permute.xlu1 %v225_v19 }
   0x5   :  { %205 = vset.pattern.permute.xlu0 %v225_v19 }
   0x8   :  { %v126_v41 = vld [vmem:[#allocation3] sm:$0xff] }
   0xa   :  { %v109_v20 = vld [vmem:[#allocation2] sm:$0xff]  ;;  %v110_v23 = vld [vmem:[#allocation2 + $0x8] sm:$0xff] }
   0xb   :  { %191 = vmatpush3.bf16.xpose.msra.mxu0 %v60_v4  ;;  %v127_v45 = vld [vmem:[#allocation3 + $0x8] sm:$0xff] }
   0xc   :  { %192 = vmatprep.subr.bf16.mxu0 %v222_v0 }
  0x13   :  { %193 = vmatpush3.bf16.xpose.msra.mxu0 %v63_v6 }
  0x14   :  { %194 = vmatprep.subr.bf16.mxu0 %v222_v0 }
  0x1b   :  { %195 = vmatpush3.bf16.xpose.msra.mxu0 %v66_v8 }
  0x22   :  { %197 = vmatmul.mubr.msk.bf16.vlgmr.msra.gmra.mrb[0].mxu0 %vm52_vm0, %v23_v11 }
  0xf5   :  { %v102_v13 = vpop.f32.mrb[0].mxu0 }
  0xf6   :  { %v198_v14 = vpop.f32.mrb[1].mxu0  ;;  %v112_v15 = vsel %vm111_vm3, %v102_v13, -inf }
  0xf7   :  { %113 = vmax.xlane.f32.xlu0 %v112_v15  ;;  %v105_v16 = vpop.f32.mrb[2].mxu0 }
  0xf8   :  { %v199_v17 = vpop.f32.mrb[3].mxu0  ;;  %v115_v18 = vsel %vm111_vm3, %v105_v16, -inf }
  0xfb   :  { %116 = vmax.xlane.f32.xlu0 %v115_v18 }
 0x184   :  { %v114_v21 = vpop.xlane.xlu0 %113 }
 0x185   :  { %v118_v22 = vmax.f32 %v109_v20, %v114_v21 }
 0x187   :  { %v120_v24 = vsub.f32 %v109_v20, %v118_v22  ;;  %157 = vst.msk [vmem:[#allocation2] sm:$0xff] %vm16_vm2, %v118_v22  ;;  %132 = vperm.xlu1 %204, %v118_v22  }
 0x188   :  { %v117_v25 = vpop.xlane.xlu0 %116 }
 0x189   :  { %v119_v26 = vmax.f32 %v110_v23, %v117_v25  ;;  %v122_v38 = vmul.f32 1.442695, %v120_v24 }
 0x18b   :  { %v121_v27 = vsub.f32 %v110_v23, %v119_v26  ;;  %158 = vst.msk [vmem:[#allocation2 + $0x8] sm:$0xff] %vm16_vm2, %v119_v26  ;;  %137 = vperm.xlu1 %204, %v119_v26  }
 0x18d   :  { %v124_v39 = vmul.f32 1.442695, %v121_v27 }
 0x18e   :  { %v162_v54 = vld [vmem:[#allocation2] sm:$0xff] }
 0x192   :  { %v163_v58 = vld [vmem:[#allocation2 + $0x8] sm:$0xff] }
 0x206   :  { %v133_v28 = vpop.permute.xlu1 %132 }
 0x207   :  { %v140_v29 = vsub.f32 %v102_v13, %v133_v28 }
 0x209   :  { %v142_v30 = vmul.f32 1.442695, %v140_v29 }
 0x20a   :  { %v138_v31 = vpop.permute.xlu1 %137 }
 0x20b   :  { %210 = vpow2.f32 %v142_v30  ;;  %v141_v32 = vsub.f32 %v105_v16, %v138_v31 }
 0x20d   :  { %v144_v33 = vmul.f32 1.442695, %v141_v32 }
 0x20f   :  { %212 = vpow2.f32 %v144_v33 }
 0x210   :  { %214 = vpow2.f32 %v122_v38 }
 0x211   :  { %216 = vpow2.f32 %v124_v39 }
 0x215   :  { %v211_v34 = vpop.eup %210 }
 0x216   :  { %v146_v35 = vsel %vm111_vm3, %v211_v34, 0.0 }
 0x217   :  { %147 = vadd.xlane.f32.xlu0 %v146_v35 }
 0x219   :  { %v213_v36 = vpop.eup %212 }
 0x21a   :  { %v149_v37 = vsel %vm111_vm3, %v213_v36, 0.0  ;;  %v215_v40 = vpop.eup %214 }
 0x21b   :  { %150 = vadd.xlane.f32.xlu1 %v149_v37  ;;  %v128_v42 = vmul.f32 %v215_v40, %v126_v41  ;;  %v217_v43 = vpop.eup %216 }
 0x21c   :  { %v129_v47 = vmul.f32 %v217_v43, %v127_v45 }
 0x2a4   :  { %v148_v44 = vpop.xlane.xlu0 %147 }
 0x2a5   :  { %v152_v46 = vadd.f32 %v148_v44, %v128_v42 }
 0x2a7   :  { %155 = vst.msk [vmem:[#allocation3] sm:$0xff] %vm16_vm2, %v152_v46 }
 0x2a8   :  { %v151_v48 = vpop.xlane.xlu1 %150 }
 0x2a9   :  { %v153_v49 = vadd.f32 %v151_v48, %v129_v47 }
 0x2ab   :  { %156 = vst.msk [vmem:[#allocation3 + $0x8] sm:$0xff] %vm16_vm2, %v153_v49 }
 0x2ae   :  { %v164_v50 = vld [vmem:[#allocation3] sm:$0xff] }
 0x2af   :  { %218 = vlog2.f32 %v164_v50 }
 0x2b2   :  { %v165_v51 = vld [vmem:[#allocation3 + $0x8] sm:$0xff] }
 0x2b3   :  { %220 = vlog2.f32 %v165_v51 }
 0x2b9   :  { %v219_v52 = vpop.eup %218 }
 0x2ba   :  { %v167_v53 = vmul.f32 0.6931472, %v219_v52 }
 0x2bc   :  { %v170_v55 = vadd.f32 %v167_v53, %v162_v54 }
 0x2bd   :  { %v221_v56 = vpop.eup %220 }
 0x2be   :  { %172 = vst.msk [vmem:[%s286_s2] sm:$0xff] %vm16_vm2, %v170_v55  ;;  %v169_v57 = vmul.f32 0.6931472, %v221_v56 }
 0x2c0   :  { %v171_v59 = vadd.f32 %v169_v57, %v163_v58 }
 0x2c2   :  { %173 = vst.msk [vmem:[%s286_s2 + $0x8] sm:$0xff] %vm16_vm2, %v171_v59 }

</bundles_post_ra>
